<compile_context>
chip_gen: v7x
topology: tpu7x:2x2x1
jax: 0.10.0
libtpu: 0.0.40
codegen_flags: <defaults>
</compile_context>

<pallas_src>
import functools

import jax
import jax.numpy as jnp
from jax.experimental import pallas as pl
from jax.experimental.pallas import tpu as pltpu

D_MODEL = 32
N_HEADS = 4
DK = D_MODEL // N_HEADS
D_FF = 64
LN_EPS = 1e-5          # torch nn.LayerNorm default
NEG_INF = -1e9

# ---- parameter-slab layout (all offsets in the [64, 384] f32 slab) ----
#   rows 0:32 , cols   0: 96   self Wq*scale | Wk | Wv
#   rows 0:32 , cols  96:128   self Wo
#   rows 0:32 , cols 128:160   cross Wq*scale
#   rows 0:32 , cols 160:224   cross Wk | Wv
#   rows 0:32 , cols 224:256   cross Wo
#   rows 0:32 , cols 256:320   FFN W1
#   rows 0:64 , cols 320:352   FFN W2
#   rows 32:45, cols   0:128   13 bias / LayerNorm vector rows (see pack_params)
VEC_ROW0 = 32
SLAB_SHAPE = (64, 384)


# --------------------------------------------------------------- kernel math
def _layer_norm(x, g, b):
    mu = jnp.mean(x, axis=-1, keepdims=True)
    var = jnp.mean(jnp.square(x - mu), axis=-1, keepdims=True)
    return (x - mu) * jax.lax.rsqrt(var + LN_EPS) * g + b


def _softmax_last(s):
    m = jnp.max(s, axis=-1, keepdims=True)
    e = jnp.exp(s - m)
    d = jnp.sum(e, axis=-1, keepdims=True)
    r = pl.reciprocal(d, approx=True)       # EUP slot (otherwise idle)
    r = r * (2.0 - d * r)                   # one Newton step -> f32-level accuracy
    return e * r


def _mha(q3, k3, v3, bias):
    """Batched multi-head attention core.

    q3: [B, Tq, D]; k3/v3: [B, Tk, D]; bias: [B, Tq, Tk] additive (0 / -1e9).
    Heads are moved to the leading batch axis ([H*B, T, dk]) via lane slices +
    axis-0 concatenation, so the whole attention is 2 batched einsums and one
    batched softmax instead of a per-head loop.
    """
    B, Tq, _ = q3.shape
    qh = jnp.concatenate([q3[:, :, h * DK:(h + 1) * DK] for h in range(N_HEADS)], axis=0)
    kh = jnp.concatenate([k3[:, :, h * DK:(h + 1) * DK] for h in range(N_HEADS)], axis=0)
    vh = jnp.concatenate([v3[:, :, h * DK:(h + 1) * DK] for h in range(N_HEADS)], axis=0)
    bh = jnp.concatenate([bias] * N_HEADS, axis=0)                      # [H*B, Tq, Tk]

    s = jnp.einsum("nqd,nkd->nqk", qh, kh,
                   preferred_element_type=jnp.float32) + bh
    p = _softmax_last(s)
    pv = jnp.einsum("nqk,nkd->nqd", p, vh,
                    preferred_element_type=jnp.float32)                 # [H*B, Tq, dk]
    # heads back to lanes (matches the per-head concat order of the reference).
    ctx = jnp.concatenate([pv[h * B:(h + 1) * B] for h in range(N_HEADS)], axis=-1)
    return ctx.reshape(B * Tq, D_MODEL)


def _decoder_block_kernel(act_ref, bias_ref, w_ref, out_ref, *, B, T, S):
    D = D_MODEL
    f32 = jnp.float32

    x = act_ref[0:B * T, :]                         # [B*T, D]   target activations
    ef = act_ref[B * T:B * (T + S), :]              # [B*S, D]   encoder activations

    VR = VEC_ROW0
    ln1_g = w_ref[VR + 0:VR + 1, :D];   ln1_b = w_ref[VR + 1:VR + 2, :D]
    sb_qkv = w_ref[VR + 2:VR + 3, :3 * D]
    sb_o = w_ref[VR + 3:VR + 4, :D]
    ln2_g = w_ref[VR + 4:VR + 5, :D];   ln2_b = w_ref[VR + 5:VR + 6, :D]
    cb_q = w_ref[VR + 6:VR + 7, :D]
    cb_kv = w_ref[VR + 7:VR + 8, :2 * D]
    cb_o = w_ref[VR + 8:VR + 9, :D]
    ln3_g = w_ref[VR + 9:VR + 10, :D];  ln3_b = w_ref[VR + 10:VR + 11, :D]
    fb1 = w_ref[VR + 11:VR + 12, :D_FF]
    fb2 = w_ref[VR + 12:VR + 13, :D]

    # additive biases were precomputed outside the kernel (0 / -1e9); load once, slice.
    biases = bias_ref[...]                          # [B, T, T + S]
    tbias = biases[:, :, 0:T]                       # [B, T, T]
    sbias = biases[:, :, T:T + S]                   # [B, T, S]

    # residual 0: x + SelfAttention(LN(x), LN(x), LN(x), tgt_mask)
    y = _layer_norm(x, ln1_g, ln1_b)
    qkv = jnp.dot(y, w_ref[0:D, 0:3 * D], preferred_element_type=f32) + sb_qkv
    qkv3 = qkv.reshape(B, T, 3 * D)
    ctx = _mha(qkv3[:, :, 0:D], qkv3[:, :, D:2 * D], qkv3[:, :, 2 * D:3 * D], tbias)
    x = x + jnp.dot(ctx, w_ref[0:D, 3 * D:4 * D], preferred_element_type=f32) + sb_o

    # residual 1: x + CrossAttention(LN(x), enc, enc, src_tgt_mask)
    y = _layer_norm(x, ln2_g, ln2_b)
    q3 = (jnp.dot(y, w_ref[0:D, 4 * D:5 * D], preferred_element_type=f32)
          + cb_q).reshape(B, T, D)
    kv3 = (jnp.dot(ef, w_ref[0:D, 5 * D:7 * D], preferred_element_type=f32)
           + cb_kv).reshape(B, S, 2 * D)
    ctx = _mha(q3, kv3[:, :, 0:D], kv3[:, :, D:2 * D], sbias)
    x = x + jnp.dot(ctx, w_ref[0:D, 7 * D:8 * D], preferred_element_type=f32) + cb_o

    # residual 2: x + FFN(LN(x))
    y = _layer_norm(x, ln3_g, ln3_b)
    h = jnp.maximum(jnp.dot(y, w_ref[0:D, 8 * D:8 * D + D_FF],
                            preferred_element_type=f32) + fb1, 0.0)
    x = x + jnp.dot(h, w_ref[0:D_FF, 8 * D + D_FF:8 * D + D_FF + D],
                    preferred_element_type=f32) + fb2

    out_ref[...] = x


# ----------------------------------------------------------------- wrapper
def _pad_to(x, axis, multiple):
    pad = (-x.shape[axis]) % multiple
    if pad == 0:
        return x
    widths = [(0, 0)] * x.ndim
    widths[axis] = (0, pad)
    return jnp.pad(x, widths)


def pack_params(params):
    """Pack all 26 raw parameters into ONE [64, 384] f32 slab (done once, host side).

    The 1/sqrt(dk) attention scale is constant-folded into Wq / bq here."""
    (ln1_g, ln1_b, swq, sbq, swk, sbk, swv, sbv, swo, sbo,
     ln2_g, ln2_b, cwq, cbq, cwk, cbk, cwv, cbv, cwo, cbo,
     ln3_g, ln3_b, fw1, fb1, fw2, fb2) = params
    scale = jnp.float32(1.0 / (DK ** 0.5))

    wa = jnp.concatenate(
        [swq * scale, swk, swv, swo, cwq * scale, cwk, cwv, cwo], axis=1)   # [32, 256]
    top = jnp.concatenate([wa, fw1], axis=1)                                # [32, 320]

    def row(*vs):
        v = jnp.concatenate([jnp.reshape(p, (-1,)) for p in vs])
        return jnp.pad(v, (0, 128 - v.shape[0]))[None, :]

    vec = jnp.concatenate([
        row(ln1_g), row(ln1_b),
        row(sbq * scale, sbk, sbv), row(sbo),
        row(ln2_g), row(ln2_b),
        row(cbq * scale), row(cbk, cbv), row(cbo),
        row(ln3_g), row(ln3_b),
        row(fb1), row(fb2),
    ], axis=0)                                                              # [13, 128]

    slab = jnp.zeros(SLAB_SHAPE, jnp.float32)
    slab = slab.at[0:32, 0:320].set(top)
    slab = slab.at[0:64, 320:352].set(fw2)
    slab = slab.at[VEC_ROW0:VEC_ROW0 + 13, 0:128].set(vec)
    return slab


def decoder_block(target, encoder_out, tgt_mask, src_mask, w_slab):
    B, T, D = target.shape
    S = encoder_out.shape[1]

    # Pad sequence dims to sublane multiples so every in-kernel
    # [B*T, .] <-> [B, T, .] reshape is tile-aligned. Padded key columns carry
    # bias -1e9 (ignored); padded query rows are sliced off at the end.
    Tp = T + (-T) % 8
    Sp = S + (-S) % 8
    target_p = _pad_to(target, 1, 8)
    enc_p = _pad_to(encoder_out, 1, 8)

    # one combined activation buffer: target rows then encoder rows
    acts = jnp.concatenate(
        [target_p.reshape(B * Tp, D), enc_p.reshape(B * Sp, D)], axis=0)

    # masks -> additive biases (0 / -1e9) precomputed outside the kernel, combined
    tb = jnp.where(_pad_to(_pad_to(tgt_mask, 1, 8), 2, 8) > 0,
                   0.0, NEG_INF).astype(jnp.float32)                 # [B, Tp, Tp]
    sb = jnp.where(_pad_to(_pad_to(src_mask, 1, 8), 2, 8) > 0,
                   0.0, NEG_INF).astype(jnp.float32)                 # [B, Tp, Sp]
    bias = jnp.concatenate([tb, sb], axis=-1)                        # [B, Tp, Tp+Sp]

    # advisory cost estimate so XLA schedules around this very short custom call
    flops = 2 * (B * Tp * D * (3 * D)            # self QKV proj
                 + 3 * B * Tp * D * D            # self Wo, cross Wq, cross Wo
                 + B * Sp * D * (2 * D)          # cross KV proj
                 + 2 * B * N_HEADS * Tp * Tp * DK    # self scores + PV
                 + 2 * B * N_HEADS * Tp * Sp * DK    # cross scores + PV
                 + 2 * B * Tp * D * D_FF)        # FFN
    transcendentals = B * N_HEADS * Tp * (Tp + Sp)
    bytes_accessed = 4 * (acts.size + bias.size + w_slab.size + B * Tp * D)

    kernel = functools.partial(_decoder_block_kernel, B=B, T=Tp, S=Sp)
    vmem = pl.BlockSpec(memory_space=pltpu.MemorySpace.VMEM)
    out_flat = pl.pallas_call(
        kernel,
        out_shape=jax.ShapeDtypeStruct((B * Tp, D), target.dtype),
        in_specs=[vmem, vmem, vmem],
        out_specs=vmem,
        cost_estimate=pl.CostEstimate(flops=int(flops),
                                      transcendentals=int(transcendentals),
                                      bytes_accessed=int(bytes_accessed)),
    )(acts, bias, w_slab)
    return out_flat.reshape(B, Tp, D)[:, :T, :]


# ----------------------------------------------------------- pure-JAX reference
def reference(target, encoder_out, tgt_mask, src_mask, params):
    (ln1_g, ln1_b, swq, sbq, swk, sbk, swv, sbv, swo, sbo,
     ln2_g, ln2_b, cwq, cbq, cwk, cbk, cwv, cbv, cwo, cbo,
     ln3_g, ln3_b, fw1, fb1, fw2, fb2) = params

    def ln(x, g, b):
        mu = jnp.mean(x, axis=-1, keepdims=True)
        var = jnp.mean((x - mu) ** 2, axis=-1, keepdims=True)
        return (x - mu) / jnp.sqrt(var + LN_EPS) * g[0] + b[0]

    def mha(q_in, k_in, v_in, mask, wq, bq, wk, bk, wv, bv, wo, bo):
        q = q_in @ wq + bq[0]
        k = k_in @ wk + bk[0]
        v = v_in @ wv + bv[0]
        outs = []
        for h in range(N_HEADS):
            sl = slice(h * DK, (h + 1) * DK)
            s = (q[:, sl] @ k[:, sl].T) / jnp.sqrt(jnp.float32(DK))
            s = jnp.where(mask > 0, s, NEG_INF)
            p = jax.nn.softmax(s, axis=-1)
            outs.append(p @ v[:, sl])
        return jnp.concatenate(outs, axis=-1) @ wo + bo[0]

    def one(x, enc, tm, sm):
        y = ln(x, ln1_g, ln1_b)
        x = x + mha(y, y, y, tm, swq, sbq, swk, sbk, swv, sbv, swo, sbo)
        y = ln(x, ln2_g, ln2_b)
        x = x + mha(y, enc, enc, sm, cwq, cbq, cwk, cbk, cwv, cbv, cwo, cbo)
        y = ln(x, ln3_g, ln3_b)
        x = x + (jnp.maximum(y @ fw1 + fb1[0], 0.0) @ fw2 + fb2[0])
        return x

    return jax.vmap(one)(target, encoder_out, tgt_mask, src_mask)


# ------------------------------------------------------------------ param init
def init_params(key):
    ks = iter(jax.random.split(key, 32))

    def lin(fan_in, fan_out):
        w = jax.random.normal(next(ks), (fan_in, fan_out), jnp.float32) / jnp.sqrt(float(fan_in))
        b = 0.1 * jax.random.normal(next(ks), (1, fan_out), jnp.float32)
        return w, b

    def ln():
        g = 1.0 + 0.1 * jax.random.normal(next(ks), (1, D_MODEL), jnp.float32)
        b = 0.1 * jax.random.normal(next(ks), (1, D_MODEL), jnp.float32)
        return g, b

    params = []
    g, b = ln(); params += [g, b]                 # self-attention sub-block
    for _ in range(4):                            # Wq, Wk, Wv, Wo
        w, bb = lin(D_MODEL, D_MODEL); params += [w, bb]
    g, b = ln(); params += [g, b]                 # cross-attention sub-block
    for _ in range(4):
        w, bb = lin(D_MODEL, D_MODEL); params += [w, bb]
    g, b = ln(); params += [g, b]                 # position-wise FFN sub-block
    w1, b1 = lin(D_MODEL, D_FF); params += [w1, b1]
    w2, b2 = lin(D_FF, D_MODEL); params += [w2, b2]
    return params


if __name__ == "__main__":
    B, T, S = 2, 8, 12
    key = jax.random.PRNGKey(0)
    k_tgt, k_enc, k_p = jax.random.split(key, 3)

    target = jax.random.normal(k_tgt, (B, T, D_MODEL), jnp.float32)
    encoder_out = jax.random.normal(k_enc, (B, S, D_MODEL), jnp.float32)

    # causal target mask + source padding mask (last 2 encoder positions padded)
    causal = jnp.tril(jnp.ones((T, T), jnp.float32))
    tgt_mask = jnp.broadcast_to(causal, (B, T, T))
    src_valid = (jnp.arange(S) < 10).astype(jnp.float32)
    src_mask = jnp.broadcast_to(src_valid[None, None, :], (B, T, S))

    params = init_params(k_p)
    w_slab = pack_params(params)

    run = jax.jit(decoder_block)
    out = jax.block_until_ready(run(target, encoder_out, tgt_mask, src_mask, w_slab))

    ref = reference(target, encoder_out, tgt_mask, src_mask, params)
    assert out.shape == (B, T, D_MODEL)
    max_err = float(jnp.max(jnp.abs(out - ref)))
    # approx-reciprocal softmax (+ Newton step) and scale folding are the only
    # numeric deviations from the exact reference -> stays well under 5e-4.
    assert jnp.allclose(out, ref, atol=5e-4, rtol=5e-4), max_err

    print("KERNEL_OK")
</pallas_src>

<mosaic_0001>
module attributes {stable_mosaic.version = 11 : i64} {
  func.func @_decoder_block_kernel(%arg0: memref<48x32xf32, #tpu.memory_space<vmem>>, %arg1: memref<2x8x24xf32, #tpu.memory_space<vmem>>, %arg2: memref<64x384xf32, #tpu.memory_space<vmem>>, %arg3: memref<16x32xf32, #tpu.memory_space<vmem>>) attributes {dimension_semantics = [], scalar_prefetch = 0 : i64, scratch_operands = 0 : i64, tpu.core_type = #tpu.core_type<tc>} {
    %c0 = arith.constant 0 : index
    %c0_0 = arith.constant 0 : index
    %0 = vector.load %arg0[%c0, %c0_0] : memref<48x32xf32, #tpu.memory_space<vmem>>, vector<16x32xf32>
    %c16 = arith.constant 16 : index
    %c0_1 = arith.constant 0 : index
    %1 = vector.load %arg0[%c16, %c0_1] : memref<48x32xf32, #tpu.memory_space<vmem>>, vector<32x32xf32>
    %c32 = arith.constant 32 : index
    %c0_2 = arith.constant 0 : index
    %2 = vector.load %arg2[%c32, %c0_2] : memref<64x384xf32, #tpu.memory_space<vmem>>, vector<1x32xf32>
    %c33 = arith.constant 33 : index
    %c0_3 = arith.constant 0 : index
    %3 = vector.load %arg2[%c33, %c0_3] : memref<64x384xf32, #tpu.memory_space<vmem>>, vector<1x32xf32>
    %c34 = arith.constant 34 : index
    %c0_4 = arith.constant 0 : index
    %4 = vector.load %arg2[%c34, %c0_4] : memref<64x384xf32, #tpu.memory_space<vmem>>, vector<1x96xf32>
    %c35 = arith.constant 35 : index
    %c0_5 = arith.constant 0 : index
    %5 = vector.load %arg2[%c35, %c0_5] : memref<64x384xf32, #tpu.memory_space<vmem>>, vector<1x32xf32>
    %c36 = arith.constant 36 : index
    %c0_6 = arith.constant 0 : index
    %6 = vector.load %arg2[%c36, %c0_6] : memref<64x384xf32, #tpu.memory_space<vmem>>, vector<1x32xf32>
    %c37 = arith.constant 37 : index
    %c0_7 = arith.constant 0 : index
    %7 = vector.load %arg2[%c37, %c0_7] : memref<64x384xf32, #tpu.memory_space<vmem>>, vector<1x32xf32>
    %c38 = arith.constant 38 : index
    %c0_8 = arith.constant 0 : index
    %8 = vector.load %arg2[%c38, %c0_8] : memref<64x384xf32, #tpu.memory_space<vmem>>, vector<1x32xf32>
    %c39 = arith.constant 39 : index
    %c0_9 = arith.constant 0 : index
    %9 = vector.load %arg2[%c39, %c0_9] : memref<64x384xf32, #tpu.memory_space<vmem>>, vector<1x64xf32>
    %c40 = arith.constant 40 : index
    %c0_10 = arith.constant 0 : index
    %10 = vector.load %arg2[%c40, %c0_10] : memref<64x384xf32, #tpu.memory_space<vmem>>, vector<1x32xf32>
    %c41 = arith.constant 41 : index
    %c0_11 = arith.constant 0 : index
    %11 = vector.load %arg2[%c41, %c0_11] : memref<64x384xf32, #tpu.memory_space<vmem>>, vector<1x32xf32>
    %c42 = arith.constant 42 : index
    %c0_12 = arith.constant 0 : index
    %12 = vector.load %arg2[%c42, %c0_12] : memref<64x384xf32, #tpu.memory_space<vmem>>, vector<1x32xf32>
    %c43 = arith.constant 43 : index
    %c0_13 = arith.constant 0 : index
    %13 = vector.load %arg2[%c43, %c0_13] : memref<64x384xf32, #tpu.memory_space<vmem>>, vector<1x64xf32>
    %c44 = arith.constant 44 : index
    %c0_14 = arith.constant 0 : index
    %14 = vector.load %arg2[%c44, %c0_14] : memref<64x384xf32, #tpu.memory_space<vmem>>, vector<1x32xf32>
    %c0_15 = arith.constant 0 : index
    %c0_16 = arith.constant 0 : index
    %c0_17 = arith.constant 0 : index
    %15 = vector.load %arg1[%c0_15, %c0_16, %c0_17] : memref<2x8x24xf32, #tpu.memory_space<vmem>>, vector<2x8x24xf32>
    %16 = vector.extract_strided_slice %15 {offsets = [0, 0, 0], sizes = [2, 8, 8], strides = [1, 1, 1]} : vector<2x8x24xf32> to vector<2x8x8xf32>
    %17 = vector.extract_strided_slice %15 {offsets = [0, 0, 8], sizes = [2, 8, 16], strides = [1, 1, 1]} : vector<2x8x24xf32> to vector<2x8x16xf32>
    %cst = arith.constant dense<0.000000e+00> : vector<16xf32>
    %18 = vector.multi_reduction <add>, %0, %cst [1] : vector<16x32xf32> to vector<16xf32>
    %19 = vector.shape_cast %18 : vector<16xf32> to vector<16x1xf32>
    %cst_18 = arith.constant 3.200000e+01 : f32
    %20 = vector.broadcast %cst_18 : f32 to vector<16x1xf32>
    %21 = arith.divf %19, %20 : vector<16x1xf32>
    %22 = vector.broadcast %21 : vector<16x1xf32> to vector<16x32xf32>
    %23 = arith.subf %0, %22 : vector<16x32xf32>
    %24 = arith.mulf %23, %23 : vector<16x32xf32>
    %cst_19 = arith.constant dense<0.000000e+00> : vector<16xf32>
    %25 = vector.multi_reduction <add>, %24, %cst_19 [1] : vector<16x32xf32> to vector<16xf32>
    %26 = vector.shape_cast %25 : vector<16xf32> to vector<16x1xf32>
    %cst_20 = arith.constant 3.200000e+01 : f32
    %27 = vector.broadcast %cst_20 : f32 to vector<16x1xf32>
    %28 = arith.divf %26, %27 : vector<16x1xf32>
    %29 = vector.broadcast %21 : vector<16x1xf32> to vector<16x32xf32>
    %30 = arith.subf %0, %29 : vector<16x32xf32>
    %cst_21 = arith.constant 9.99999974E-6 : f32
    %31 = vector.broadcast %cst_21 : f32 to vector<16x1xf32>
    %32 = arith.addf %28, %31 : vector<16x1xf32>
    %33 = math.rsqrt %32 : vector<16x1xf32>
    %34 = vector.broadcast %33 : vector<16x1xf32> to vector<16x32xf32>
    %35 = arith.mulf %30, %34 : vector<16x32xf32>
    %36 = vector.broadcast %2 : vector<1x32xf32> to vector<16x32xf32>
    %37 = arith.mulf %35, %36 : vector<16x32xf32>
    %38 = vector.broadcast %3 : vector<1x32xf32> to vector<16x32xf32>
    %39 = arith.addf %37, %38 : vector<16x32xf32>
    %c0_22 = arith.constant 0 : index
    %c0_23 = arith.constant 0 : index
    %40 = vector.load %arg2[%c0_22, %c0_23] : memref<64x384xf32, #tpu.memory_space<vmem>>, vector<32x96xf32>
    %cst_24 = arith.constant dense<0.000000e+00> : vector<16x96xf32>
    %41 = tpu.matmul %39, %40, %cst_24 {dimension_numbers = #tpu.dot_dimension_numbers<[1], [0], [0], [1], [0, 0, 1, 1], [], []>} : vector<16x32xf32>, vector<32x96xf32>, vector<16x96xf32> -> vector<16x96xf32>
    %42 = vector.broadcast %4 : vector<1x96xf32> to vector<16x96xf32>
    %43 = arith.addf %41, %42 : vector<16x96xf32>
    %44 = vector.shape_cast %43 : vector<16x96xf32> to vector<2x8x96xf32>
    %45 = vector.extract_strided_slice %44 {offsets = [0, 0, 0], sizes = [2, 8, 32], strides = [1, 1, 1]} : vector<2x8x96xf32> to vector<2x8x32xf32>
    %46 = vector.extract_strided_slice %44 {offsets = [0, 0, 32], sizes = [2, 8, 32], strides = [1, 1, 1]} : vector<2x8x96xf32> to vector<2x8x32xf32>
    %47 = vector.extract_strided_slice %44 {offsets = [0, 0, 64], sizes = [2, 8, 32], strides = [1, 1, 1]} : vector<2x8x96xf32> to vector<2x8x32xf32>
    %48 = vector.extract_strided_slice %45 {offsets = [0, 0, 0], sizes = [2, 8, 8], strides = [1, 1, 1]} : vector<2x8x32xf32> to vector<2x8x8xf32>
    %49 = vector.extract_strided_slice %45 {offsets = [0, 0, 8], sizes = [2, 8, 8], strides = [1, 1, 1]} : vector<2x8x32xf32> to vector<2x8x8xf32>
    %50 = vector.extract_strided_slice %45 {offsets = [0, 0, 16], sizes = [2, 8, 8], strides = [1, 1, 1]} : vector<2x8x32xf32> to vector<2x8x8xf32>
    %51 = vector.extract_strided_slice %45 {offsets = [0, 0, 24], sizes = [2, 8, 8], strides = [1, 1, 1]} : vector<2x8x32xf32> to vector<2x8x8xf32>
    %52 = tpu.concatenate %48, %49, %50, %51 in 0 : vector<2x8x8xf32>, vector<2x8x8xf32>, vector<2x8x8xf32>, vector<2x8x8xf32> -> vector<8x8x8xf32>
    %53 = vector.extract_strided_slice %46 {offsets = [0, 0, 0], sizes = [2, 8, 8], strides = [1, 1, 1]} : vector<2x8x32xf32> to vector<2x8x8xf32>
    %54 = vector.extract_strided_slice %46 {offsets = [0, 0, 8], sizes = [2, 8, 8], strides = [1, 1, 1]} : vector<2x8x32xf32> to vector<2x8x8xf32>
    %55 = vector.extract_strided_slice %46 {offsets = [0, 0, 16], sizes = [2, 8, 8], strides = [1, 1, 1]} : vector<2x8x32xf32> to vector<2x8x8xf32>
    %56 = vector.extract_strided_slice %46 {offsets = [0, 0, 24], sizes = [2, 8, 8], strides = [1, 1, 1]} : vector<2x8x32xf32> to vector<2x8x8xf32>
    %57 = tpu.concatenate %53, %54, %55, %56 in 0 : vector<2x8x8xf32>, vector<2x8x8xf32>, vector<2x8x8xf32>, vector<2x8x8xf32> -> vector<8x8x8xf32>
    %58 = vector.extract_strided_slice %47 {offsets = [0, 0, 0], sizes = [2, 8, 8], strides = [1, 1, 1]} : vector<2x8x32xf32> to vector<2x8x8xf32>
    %59 = vector.extract_strided_slice %47 {offsets = [0, 0, 8], sizes = [2, 8, 8], strides = [1, 1, 1]} : vector<2x8x32xf32> to vector<2x8x8xf32>
    %60 = vector.extract_strided_slice %47 {offsets = [0, 0, 16], sizes = [2, 8, 8], strides = [1, 1, 1]} : vector<2x8x32xf32> to vector<2x8x8xf32>
    %61 = vector.extract_strided_slice %47 {offsets = [0, 0, 24], sizes = [2, 8, 8], strides = [1, 1, 1]} : vector<2x8x32xf32> to vector<2x8x8xf32>
    %62 = tpu.concatenate %58, %59, %60, %61 in 0 : vector<2x8x8xf32>, vector<2x8x8xf32>, vector<2x8x8xf32>, vector<2x8x8xf32> -> vector<8x8x8xf32>
    %63 = tpu.concatenate %16, %16, %16, %16 in 0 : vector<2x8x8xf32>, vector<2x8x8xf32>, vector<2x8x8xf32>, vector<2x8x8xf32> -> vector<8x8x8xf32>
    "tpu.trace_start"() <{level = 10 : i32, message = "nqd,nkd->nqk"}> : () -> ()
    %cst_25 = arith.constant dense<0.000000e+00> : vector<8x8x8xf32>
    %64 = tpu.matmul %52, %57, %cst_25 {dimension_numbers = #tpu.dot_dimension_numbers<[2], [2], [1], [1], [0, 0, 0, 1, 1, 1], [0], [0]>} : vector<8x8x8xf32>, vector<8x8x8xf32>, vector<8x8x8xf32> -> vector<8x8x8xf32>
    "tpu.trace_stop"() : () -> ()
    %65 = arith.addf %64, %63 : vector<8x8x8xf32>
    %cst_26 = arith.constant dense<0xFF800000> : vector<8x8xf32>
    %66 = vector.multi_reduction <maximumf>, %65, %cst_26 [2] : vector<8x8x8xf32> to vector<8x8xf32>
    %67 = vector.shape_cast %66 : vector<8x8xf32> to vector<8x8x1xf32>
    %68 = vector.broadcast %67 : vector<8x8x1xf32> to vector<8x8x8xf32>
    %69 = arith.subf %65, %68 : vector<8x8x8xf32>
    %70 = math.exp %69 : vector<8x8x8xf32>
    %cst_27 = arith.constant dense<0.000000e+00> : vector<8x8xf32>
    %71 = vector.multi_reduction <add>, %70, %cst_27 [2] : vector<8x8x8xf32> to vector<8x8xf32>
    %72 = vector.shape_cast %71 : vector<8x8xf32> to vector<8x8x1xf32>
    %73 = tpu.reciprocal %72 {approx = true} : vector<8x8x1xf32> -> vector<8x8x1xf32>
    %74 = arith.mulf %72, %73 : vector<8x8x1xf32>
    %cst_28 = arith.constant 2.000000e+00 : f32
    %75 = vector.broadcast %cst_28 : f32 to vector<8x8x1xf32>
    %76 = arith.subf %75, %74 : vector<8x8x1xf32>
    %77 = arith.mulf %73, %76 : vector<8x8x1xf32>
    %78 = vector.broadcast %77 : vector<8x8x1xf32> to vector<8x8x8xf32>
    %79 = arith.mulf %70, %78 : vector<8x8x8xf32>
    "tpu.trace_start"() <{level = 10 : i32, message = "nqk,nkd->nqd"}> : () -> ()
    %cst_29 = arith.constant dense<0.000000e+00> : vector<8x8x8xf32>
    %80 = tpu.matmul %79, %62, %cst_29 {dimension_numbers = #tpu.dot_dimension_numbers<[2], [1], [1], [2], [0, 0, 0, 1, 1, 2], [0], [0]>} : vector<8x8x8xf32>, vector<8x8x8xf32>, vector<8x8x8xf32> -> vector<8x8x8xf32>
    "tpu.trace_stop"() : () -> ()
    %81 = vector.extract_strided_slice %80 {offsets = [0, 0, 0], sizes = [2, 8, 8], strides = [1, 1, 1]} : vector<8x8x8xf32> to vector<2x8x8xf32>
    %82 = vector.extract_strided_slice %80 {offsets = [2, 0, 0], sizes = [2, 8, 8], strides = [1, 1, 1]} : vector<8x8x8xf32> to vector<2x8x8xf32>
    %83 = vector.extract_strided_slice %80 {offsets = [4, 0, 0], sizes = [2, 8, 8], strides = [1, 1, 1]} : vector<8x8x8xf32> to vector<2x8x8xf32>
    %84 = vector.extract_strided_slice %80 {offsets = [6, 0, 0], sizes = [2, 8, 8], strides = [1, 1, 1]} : vector<8x8x8xf32> to vector<2x8x8xf32>
    %85 = tpu.concatenate %81, %82, %83, %84 in 2 : vector<2x8x8xf32>, vector<2x8x8xf32>, vector<2x8x8xf32>, vector<2x8x8xf32> -> vector<2x8x32xf32>
    %86 = vector.shape_cast %85 : vector<2x8x32xf32> to vector<16x32xf32>
    %c0_30 = arith.constant 0 : index
    %c96 = arith.constant 96 : index
    %87 = vector.load %arg2[%c0_30, %c96] : memref<64x384xf32, #tpu.memory_space<vmem>>, vector<32x32xf32>
    %cst_31 = arith.constant dense<0.000000e+00> : vector<16x32xf32>
    %88 = tpu.matmul %86, %87, %cst_31 {dimension_numbers = #tpu.dot_dimension_numbers<[1], [0], [0], [1], [0, 0, 1, 1], [], []>} : vector<16x32xf32>, vector<32x32xf32>, vector<16x32xf32> -> vector<16x32xf32>
    %89 = arith.addf %0, %88 : vector<16x32xf32>
    %90 = vector.broadcast %5 : vector<1x32xf32> to vector<16x32xf32>
    %91 = arith.addf %89, %90 : vector<16x32xf32>
    %cst_32 = arith.constant dense<0.000000e+00> : vector<16xf32>
    %92 = vector.multi_reduction <add>, %91, %cst_32 [1] : vector<16x32xf32> to vector<16xf32>
    %93 = vector.shape_cast %92 : vector<16xf32> to vector<16x1xf32>
    %cst_33 = arith.constant 3.200000e+01 : f32
    %94 = vector.broadcast %cst_33 : f32 to vector<16x1xf32>
    %95 = arith.divf %93, %94 : vector<16x1xf32>
    %96 = vector.broadcast %95 : vector<16x1xf32> to vector<16x32xf32>
    %97 = arith.subf %91, %96 : vector<16x32xf32>
    %98 = arith.mulf %97, %97 : vector<16x32xf32>
    %cst_34 = arith.constant dense<0.000000e+00> : vector<16xf32>
    %99 = vector.multi_reduction <add>, %98, %cst_34 [1] : vector<16x32xf32> to vector<16xf32>
    %100 = vector.shape_cast %99 : vector<16xf32> to vector<16x1xf32>
    %cst_35 = arith.constant 3.200000e+01 : f32
    %101 = vector.broadcast %cst_35 : f32 to vector<16x1xf32>
    %102 = arith.divf %100, %101 : vector<16x1xf32>
    %103 = vector.broadcast %95 : vector<16x1xf32> to vector<16x32xf32>
    %104 = arith.subf %91, %103 : vector<16x32xf32>
    %cst_36 = arith.constant 9.99999974E-6 : f32
    %105 = vector.broadcast %cst_36 : f32 to vector<16x1xf32>
    %106 = arith.addf %102, %105 : vector<16x1xf32>
    %107 = math.rsqrt %106 : vector<16x1xf32>
    %108 = vector.broadcast %107 : vector<16x1xf32> to vector<16x32xf32>
    %109 = arith.mulf %104, %108 : vector<16x32xf32>
    %110 = vector.broadcast %6 : vector<1x32xf32> to vector<16x32xf32>
    %111 = arith.mulf %109, %110 : vector<16x32xf32>
    %112 = vector.broadcast %7 : vector<1x32xf32> to vector<16x32xf32>
    %113 = arith.addf %111, %112 : vector<16x32xf32>
    %c0_37 = arith.constant 0 : index
    %c128 = arith.constant 128 : index
    %114 = vector.load %arg2[%c0_37, %c128] : memref<64x384xf32, #tpu.memory_space<vmem>>, vector<32x32xf32>
    %cst_38 = arith.constant dense<0.000000e+00> : vector<16x32xf32>
    %115 = tpu.matmul %113, %114, %cst_38 {dimension_numbers = #tpu.dot_dimension_numbers<[1], [0], [0], [1], [0, 0, 1, 1], [], []>} : vector<16x32xf32>, vector<32x32xf32>, vector<16x32xf32> -> vector<16x32xf32>
    %116 = vector.broadcast %8 : vector<1x32xf32> to vector<16x32xf32>
    %117 = arith.addf %115, %116 : vector<16x32xf32>
    %118 = vector.shape_cast %117 : vector<16x32xf32> to vector<2x8x32xf32>
    %c0_39 = arith.constant 0 : index
    %c160 = arith.constant 160 : index
    %119 = vector.load %arg2[%c0_39, %c160] : memref<64x384xf32, #tpu.memory_space<vmem>>, vector<32x64xf32>
    %cst_40 = arith.constant dense<0.000000e+00> : vector<32x64xf32>
    %120 = tpu.matmul %1, %119, %cst_40 {dimension_numbers = #tpu.dot_dimension_numbers<[1], [0], [0], [1], [0, 0, 1, 1], [], []>} : vector<32x32xf32>, vector<32x64xf32>, vector<32x64xf32> -> vector<32x64xf32>
    %121 = vector.broadcast %9 : vector<1x64xf32> to vector<32x64xf32>
    %122 = arith.addf %120, %121 : vector<32x64xf32>
    %123 = vector.shape_cast %122 : vector<32x64xf32> to vector<2x16x64xf32>
    %124 = vector.extract_strided_slice %123 {offsets = [0, 0, 0], sizes = [2, 16, 32], strides = [1, 1, 1]} : vector<2x16x64xf32> to vector<2x16x32xf32>
    %125 = vector.extract_strided_slice %123 {offsets = [0, 0, 32], sizes = [2, 16, 32], strides = [1, 1, 1]} : vector<2x16x64xf32> to vector<2x16x32xf32>
    %126 = vector.extract_strided_slice %118 {offsets = [0, 0, 0], sizes = [2, 8, 8], strides = [1, 1, 1]} : vector<2x8x32xf32> to vector<2x8x8xf32>
    %127 = vector.extract_strided_slice %118 {offsets = [0, 0, 8], sizes = [2, 8, 8], strides = [1, 1, 1]} : vector<2x8x32xf32> to vector<2x8x8xf32>
    %128 = vector.extract_strided_slice %118 {offsets = [0, 0, 16], sizes = [2, 8, 8], strides = [1, 1, 1]} : vector<2x8x32xf32> to vector<2x8x8xf32>
    %129 = vector.extract_strided_slice %118 {offsets = [0, 0, 24], sizes = [2, 8, 8], strides = [1, 1, 1]} : vector<2x8x32xf32> to vector<2x8x8xf32>
    %130 = tpu.concatenate %126, %127, %128, %129 in 0 : vector<2x8x8xf32>, vector<2x8x8xf32>, vector<2x8x8xf32>, vector<2x8x8xf32> -> vector<8x8x8xf32>
    %131 = vector.extract_strided_slice %124 {offsets = [0, 0, 0], sizes = [2, 16, 8], strides = [1, 1, 1]} : vector<2x16x32xf32> to vector<2x16x8xf32>
    %132 = vector.extract_strided_slice %124 {offsets = [0, 0, 8], sizes = [2, 16, 8], strides = [1, 1, 1]} : vector<2x16x32xf32> to vector<2x16x8xf32>
    %133 = vector.extract_strided_slice %124 {offsets = [0, 0, 16], sizes = [2, 16, 8], strides = [1, 1, 1]} : vector<2x16x32xf32> to vector<2x16x8xf32>
    %134 = vector.extract_strided_slice %124 {offsets = [0, 0, 24], sizes = [2, 16, 8], strides = [1, 1, 1]} : vector<2x16x32xf32> to vector<2x16x8xf32>
    %135 = tpu.concatenate %131, %132, %133, %134 in 0 : vector<2x16x8xf32>, vector<2x16x8xf32>, vector<2x16x8xf32>, vector<2x16x8xf32> -> vector<8x16x8xf32>
    %136 = vector.extract_strided_slice %125 {offsets = [0, 0, 0], sizes = [2, 16, 8], strides = [1, 1, 1]} : vector<2x16x32xf32> to vector<2x16x8xf32>
    %137 = vector.extract_strided_slice %125 {offsets = [0, 0, 8], sizes = [2, 16, 8], strides = [1, 1, 1]} : vector<2x16x32xf32> to vector<2x16x8xf32>
    %138 = vector.extract_strided_slice %125 {offsets = [0, 0, 16], sizes = [2, 16, 8], strides = [1, 1, 1]} : vector<2x16x32xf32> to vector<2x16x8xf32>
    %139 = vector.extract_strided_slice %125 {offsets = [0, 0, 24], sizes = [2, 16, 8], strides = [1, 1, 1]} : vector<2x16x32xf32> to vector<2x16x8xf32>
    %140 = tpu.concatenate %136, %137, %138, %139 in 0 : vector<2x16x8xf32>, vector<2x16x8xf32>, vector<2x16x8xf32>, vector<2x16x8xf32> -> vector<8x16x8xf32>
    %141 = tpu.concatenate %17, %17, %17, %17 in 0 : vector<2x8x16xf32>, vector<2x8x16xf32>, vector<2x8x16xf32>, vector<2x8x16xf32> -> vector<8x8x16xf32>
    "tpu.trace_start"() <{level = 10 : i32, message = "nqd,nkd->nqk"}> : () -> ()
    %cst_41 = arith.constant dense<0.000000e+00> : vector<8x8x16xf32>
    %142 = tpu.matmul %130, %135, %cst_41 {dimension_numbers = #tpu.dot_dimension_numbers<[2], [2], [1], [1], [0, 0, 0, 1, 1, 1], [0], [0]>} : vector<8x8x8xf32>, vector<8x16x8xf32>, vector<8x8x16xf32> -> vector<8x8x16xf32>
    "tpu.trace_stop"() : () -> ()
    %143 = arith.addf %142, %141 : vector<8x8x16xf32>
    %cst_42 = arith.constant dense<0xFF800000> : vector<8x8xf32>
    %144 = vector.multi_reduction <maximumf>, %143, %cst_42 [2] : vector<8x8x16xf32> to vector<8x8xf32>
    %145 = vector.shape_cast %144 : vector<8x8xf32> to vector<8x8x1xf32>
    %146 = vector.broadcast %145 : vector<8x8x1xf32> to vector<8x8x16xf32>
    %147 = arith.subf %143, %146 : vector<8x8x16xf32>
    %148 = math.exp %147 : vector<8x8x16xf32>
    %cst_43 = arith.constant dense<0.000000e+00> : vector<8x8xf32>
    %149 = vector.multi_reduction <add>, %148, %cst_43 [2] : vector<8x8x16xf32> to vector<8x8xf32>
    %150 = vector.shape_cast %149 : vector<8x8xf32> to vector<8x8x1xf32>
    %151 = tpu.reciprocal %150 {approx = true} : vector<8x8x1xf32> -> vector<8x8x1xf32>
    %152 = arith.mulf %150, %151 : vector<8x8x1xf32>
    %cst_44 = arith.constant 2.000000e+00 : f32
    %153 = vector.broadcast %cst_44 : f32 to vector<8x8x1xf32>
    %154 = arith.subf %153, %152 : vector<8x8x1xf32>
    %155 = arith.mulf %151, %154 : vector<8x8x1xf32>
    %156 = vector.broadcast %155 : vector<8x8x1xf32> to vector<8x8x16xf32>
    %157 = arith.mulf %148, %156 : vector<8x8x16xf32>
    "tpu.trace_start"() <{level = 10 : i32, message = "nqk,nkd->nqd"}> : () -> ()
    %cst_45 = arith.constant dense<0.000000e+00> : vector<8x8x8xf32>
    %158 = tpu.matmul %157, %140, %cst_45 {dimension_numbers = #tpu.dot_dimension_numbers<[2], [1], [1], [2], [0, 0, 0, 1, 1, 2], [0], [0]>} : vector<8x8x16xf32>, vector<8x16x8xf32>, vector<8x8x8xf32> -> vector<8x8x8xf32>
    "tpu.trace_stop"() : () -> ()
    %159 = vector.extract_strided_slice %158 {offsets = [0, 0, 0], sizes = [2, 8, 8], strides = [1, 1, 1]} : vector<8x8x8xf32> to vector<2x8x8xf32>
    %160 = vector.extract_strided_slice %158 {offsets = [2, 0, 0], sizes = [2, 8, 8], strides = [1, 1, 1]} : vector<8x8x8xf32> to vector<2x8x8xf32>
    %161 = vector.extract_strided_slice %158 {offsets = [4, 0, 0], sizes = [2, 8, 8], strides = [1, 1, 1]} : vector<8x8x8xf32> to vector<2x8x8xf32>
    %162 = vector.extract_strided_slice %158 {offsets = [6, 0, 0], sizes = [2, 8, 8], strides = [1, 1, 1]} : vector<8x8x8xf32> to vector<2x8x8xf32>
    %163 = tpu.concatenate %159, %160, %161, %162 in 2 : vector<2x8x8xf32>, vector<2x8x8xf32>, vector<2x8x8xf32>, vector<2x8x8xf32> -> vector<2x8x32xf32>
    %164 = vector.shape_cast %163 : vector<2x8x32xf32> to vector<16x32xf32>
    %c0_46 = arith.constant 0 : index
    %c224 = arith.constant 224 : index
    %165 = vector.load %arg2[%c0_46, %c224] : memref<64x384xf32, #tpu.memory_space<vmem>>, vector<32x32xf32>
    %cst_47 = arith.constant dense<0.000000e+00> : vector<16x32xf32>
    %166 = tpu.matmul %164, %165, %cst_47 {dimension_numbers = #tpu.dot_dimension_numbers<[1], [0], [0], [1], [0, 0, 1, 1], [], []>} : vector<16x32xf32>, vector<32x32xf32>, vector<16x32xf32> -> vector<16x32xf32>
    %167 = arith.addf %91, %166 : vector<16x32xf32>
    %168 = vector.broadcast %10 : vector<1x32xf32> to vector<16x32xf32>
    %169 = arith.addf %167, %168 : vector<16x32xf32>
    %cst_48 = arith.constant dense<0.000000e+00> : vector<16xf32>
    %170 = vector.multi_reduction <add>, %169, %cst_48 [1] : vector<16x32xf32> to vector<16xf32>
    %171 = vector.shape_cast %170 : vector<16xf32> to vector<16x1xf32>
    %cst_49 = arith.constant 3.200000e+01 : f32
    %172 = vector.broadcast %cst_49 : f32 to vector<16x1xf32>
    %173 = arith.divf %171, %172 : vector<16x1xf32>
    %174 = vector.broadcast %173 : vector<16x1xf32> to vector<16x32xf32>
    %175 = arith.subf %169, %174 : vector<16x32xf32>
    %176 = arith.mulf %175, %175 : vector<16x32xf32>
    %cst_50 = arith.constant dense<0.000000e+00> : vector<16xf32>
    %177 = vector.multi_reduction <add>, %176, %cst_50 [1] : vector<16x32xf32> to vector<16xf32>
    %178 = vector.shape_cast %177 : vector<16xf32> to vector<16x1xf32>
    %cst_51 = arith.constant 3.200000e+01 : f32
    %179 = vector.broadcast %cst_51 : f32 to vector<16x1xf32>
    %180 = arith.divf %178, %179 : vector<16x1xf32>
    %181 = vector.broadcast %173 : vector<16x1xf32> to vector<16x32xf32>
    %182 = arith.subf %169, %181 : vector<16x32xf32>
    %cst_52 = arith.constant 9.99999974E-6 : f32
    %183 = vector.broadcast %cst_52 : f32 to vector<16x1xf32>
    %184 = arith.addf %180, %183 : vector<16x1xf32>
    %185 = math.rsqrt %184 : vector<16x1xf32>
    %186 = vector.broadcast %185 : vector<16x1xf32> to vector<16x32xf32>
    %187 = arith.mulf %182, %186 : vector<16x32xf32>
    %188 = vector.broadcast %11 : vector<1x32xf32> to vector<16x32xf32>
    %189 = arith.mulf %187, %188 : vector<16x32xf32>
    %190 = vector.broadcast %12 : vector<1x32xf32> to vector<16x32xf32>
    %191 = arith.addf %189, %190 : vector<16x32xf32>
    %c0_53 = arith.constant 0 : index
    %c256 = arith.constant 256 : index
    %192 = vector.load %arg2[%c0_53, %c256] : memref<64x384xf32, #tpu.memory_space<vmem>>, vector<32x64xf32>
    %cst_54 = arith.constant dense<0.000000e+00> : vector<16x64xf32>
    %193 = tpu.matmul %191, %192, %cst_54 {dimension_numbers = #tpu.dot_dimension_numbers<[1], [0], [0], [1], [0, 0, 1, 1], [], []>} : vector<16x32xf32>, vector<32x64xf32>, vector<16x64xf32> -> vector<16x64xf32>
    %194 = vector.broadcast %13 : vector<1x64xf32> to vector<16x64xf32>
    %195 = arith.addf %193, %194 : vector<16x64xf32>
    %cst_55 = arith.constant 0.000000e+00 : f32
    %196 = vector.broadcast %cst_55 : f32 to vector<16x64xf32>
    %197 = arith.maximumf %195, %196 : vector<16x64xf32>
    %c0_56 = arith.constant 0 : index
    %c320 = arith.constant 320 : index
    %198 = vector.load %arg2[%c0_56, %c320] : memref<64x384xf32, #tpu.memory_space<vmem>>, vector<64x32xf32>
    %cst_57 = arith.constant dense<0.000000e+00> : vector<16x32xf32>
    %199 = tpu.matmul %197, %198, %cst_57 {dimension_numbers = #tpu.dot_dimension_numbers<[1], [0], [0], [1], [0, 0, 1, 1], [], []>} : vector<16x64xf32>, vector<64x32xf32>, vector<16x32xf32> -> vector<16x32xf32>
    %200 = arith.addf %169, %199 : vector<16x32xf32>
    %201 = vector.broadcast %14 : vector<1x32xf32> to vector<16x32xf32>
    %202 = arith.addf %200, %201 : vector<16x32xf32>
    %c0_58 = arith.constant 0 : index
    %c0_59 = arith.constant 0 : index
    %203 = vector.load %arg3[%c0_58, %c0_59] : memref<16x32xf32, #tpu.memory_space<vmem>>, vector<16x32xf32>
    tpu.vector_store %arg3[%c0_58, %c0_59], %202 {strides = array<i32>} : memref<16x32xf32, #tpu.memory_space<vmem>>, vector<16x32xf32>,
    return
  }
}

</mosaic_0001>

<bundles_post_ra>
// kernel: decoder_block.1
= control target key start
LH: loop header
LB: loop body
LE: loop exit
PB: predicated region body
PF: predicated region fallthrough
CT: control target
= control target key end

     0   :  { %vm36_vm0 = vcmask 261120   ;;  %s5171_s0 = inlined_call_operand.vmem [shape: f32[48,32], index: 0, kind: input, shape index: {}]   ;;  %s5172_s1 = inlined_call_operand.vmem [shape: f32[2,8,24], index: 1, kind: input, shape index: {}]   ;;  %s5173_s2 = inlined_call_operand.vmem [shape: f32[64,384], index: 2, kind: input, shape index: {}]   ;;  %s5174_s3 = inlined_call_operand.hbm [shape: f32[16,32], index: 3, kind: output, shape index: {}]  }
   0x1   :  { %v4530_v0 = vld [vmem:[%s5171_s0] sm:$0xff]  ;;  %v4535_v1 = vld [vmem:[%s5171_s0 + $0x8] sm:$0xff] }
   0x2   :  { %8 = vsyncpa [#allocation3], 0  ;;  %v37_v2 = vsel %vm36_vm0, %v4530_v0, 0.0  ;;  %v40_v3 = vsel %vm36_vm0, %v4535_v1, 0.0  ;;  %v4548_v14 = vld [vmem:[%s5173_s2] sm:$0xff]  ;;  %v4553_v15 = vld [vmem:[%s5173_s2 + $0x18] sm:$0xff] }
   0x3   :  { %38 = vadd.xlane.f32.xlu0 %v37_v2  ;;  %v4558_v16 = vld [vmem:[%s5173_s2 + $0x30] sm:$0xff]  ;;  %v4139_v17 = vpack.c.bf16 %v4553_v15, %v4548_v14  ;;  %v4565_v18 = vld [vmem:[%s5173_s2 + $0x48] sm:$0xff]  ;;  %v21_v27 = vld [vmem:[%s5173_s2 + $0x60] ss:$0 sm:$0xff]  ;;  %v4493_v37 = vmov 0.0   ;;  %vm4494_vm1 = vmmov 0  }
   0x4   :  { %v4143_v19 = vpack.c.bf16 %v4565_v18, %v4558_v16  ;;  %v22_v29 = vld [vmem:[%s5173_s2 + $0x61] ss:$0 sm:$0xff]  ;;  %v23_v36 = vld [vmem:[%s5173_s2 + $0x62] ss:$0 sm:$0xff]  ;;  %3880 = vmatprep.subr.mxu0 %v4493_v37  ;;  %3882 = vmatprep.mubr.msk.f32.mxu0 %vm4494_vm1, %v4493_v37  ;;  %s4495_s30 = smov 120   ;;  %s4496_s4 = smov 112  }
   0x5   :  { %4140 = vmatprep.subr.bf16.mxu1 %v4139_v17  ;;  %s4497_s5 = smov 104   ;;  %s4498_s6 = smov 96   ;;  %vm169_vm2 = vcmask 64512   ;;  %v4681_v56 = vld [vmem:[%s5172_s1] sm:$0xff]  ;;  %v4688_v61 = vld [vmem:[%s5172_s1 + $0x8] sm:$0xff]  ;;  %vm1522_vm3 = vcmask 130048  }
   0x6   :  { %4142 = vmatpush3.bf16.msra.mxu1 %v4139_v17  ;;  %s4499_s1 = smov 64   ;;  %s4500_s11 = smov 32   ;;  %vm1525_vm4 = vcmask 195584   ;;  %vm4880_vm5 = vmpackc.low %vm169_vm2, %vm169_vm2  ;;  %vm3555_vm6 = vcmask 523264  }
   0x7   :  { %41 = vadd.xlane.f32.xlu0 %v40_v3  ;;  %4144 = vmatprep.subr.bf16.mxu1 %v4143_v19  ;;  %s4501_s12 = smov 8   ;;  %s4502_s13 = smov 16  }
   0x8   :  { %s4503_s14 = smov 24   ;;  %s4505_s19 = smov [#allocation2]  }
   0x9   :  { %s3648_s20 = sshll.u32 %s4505_s19, 4  ;;  %s3649_s20 = int_to_ptr.vmem [resolvable:$true] %s3648_s20 }
   0xa   :  { %4146 = vmatpush3.bf16.msra.mxu1 %v4143_v19  ;;  %p4474_p1 = scmp.lt.s32.totalorder %s3649_s20, %s3649_s20 }
   0xb   :  { %3870 = vmatprep.subr.mxu1 %v4493_v37 }
  0x90   :  { %v39_v4 = vpop.xlane.xlu0 %38 }
  0x91   :  { %v44_v5 = vmul.f32 0.03125, %v39_v4 }
  0x93   :  { %v46_v6 = vsub.f32 %v4530_v0, %v44_v5 }
  0x94   :  { %v42_v7 = vpop.xlane.xlu0 %41 }
  0x95   :  { %v45_v8 = vmul.f32 0.03125, %v42_v7  ;;  %v48_v9 = vmul.f32 %v46_v6, %v46_v6 }
  0x97   :  { %v47_v10 = vsub.f32 %v4535_v1, %v45_v8  ;;  %v50_v11 = vsel %vm36_vm0, %v48_v9, 0.0 }
  0x98   :  { %51 = vadd.xlane.f32.xlu1 %v50_v11 }
  0x99   :  { %v49_v12 = vmul.f32 %v47_v10, %v47_v10 }
  0x9b   :  { %v53_v13 = vsel %vm36_vm0, %v49_v12, 0.0 }
  0x9c   :  { %54 = vadd.xlane.f32.xlu1 %v53_v13 }
 0x125   :  { %v52_v20 = vpop.xlane.xlu1 %51 }
 0x126   :  { %v56_v21 = vmul.f32 0.03125, %v52_v20 }
 0x128   :  { %v58_v22 = vadd.f32 1e-05, %v56_v21 }
 0x129   :  { %v55_v23 = vpop.xlane.xlu1 %54 }
 0x12a   :  { %4393 = vrsqrt.f32 %v58_v22  ;;  %v57_v24 = vmul.f32 0.03125, %v55_v23 }
 0x12c   :  { %v59_v25 = vadd.f32 1e-05, %v57_v24 }
 0x12e   :  { %4395 = vrsqrt.f32 %v59_v25 }
 0x134   :  { %v4394_v26 = vpop.eup %4393 }
 0x135   :  { %v62_v28 = vmul.f32 %v4394_v26, %v46_v6 }
 0x137   :  { %v64_v30 = vmul.f32 %v62_v28, %v21_v27 }
 0x138   :  { %v4396_v31 = vpop.eup %4395 }
 0x139   :  { %v63_v32 = vmul.f32 %v4396_v31, %v47_v10  ;;  %v66_v33 = vadd.f32 %v64_v30, %v22_v29 }
 0x13b   :  { %v65_v34 = vmul.f32 %v63_v32, %v21_v27  ;;  %3867 = vmatprep.mubr.msk.f32.mxu1 %vm36_vm0, %v66_v33 }
 0x13d   :  { %v67_v35 = vadd.f32 %v65_v34, %v22_v29 }
 0x13f   :  { %3868 = vmatmul.mubr.msk.f32.vlgmr.msra.gmra.mrb[0].mxu1 %vm36_vm0, %v67_v35 }
 0x140   :  { %3872 = vmatprep.mubr.msk.f32.mxu1 %vm4494_vm1, %v4493_v37 }
 0x212   :  { %v3869_v38 = vpop.f32.mrb[0].mxu1 }
 0x213   :  { %v4586_v39 = vadd.f32 %v3869_v38, %v23_v36  ;;  %v144_v40 = vpop.f32.mrb[1].mxu1 }
 0x214   :  { %v4588_v41 = vadd.f32 %v144_v40, %v23_v36 }
 0x215   :  { %157 = vrot.lane.b32.xlu1 %v4586_v39, %s4495_s30 }
 0x216   :  { %155 = vrot.lane.b32.xlu0 %v4588_v41, %s4495_s30 }
 0x219   :  { %159 = vrot.lane.b32.xlu1 %v4588_v41, %s4496_s4 }
 0x21a   :  { %163 = vrot.lane.b32.xlu0 %v4588_v41, %s4497_s5 }
 0x21d   :  { %161 = vrot.lane.b32.xlu1 %v4586_v39, %s4496_s4 }
 0x21e   :  { %167 = vrot.lane.b32.xlu0 %v4588_v41, %s4498_s6 }
 0x221   :  { %165 = vrot.lane.b32.xlu1 %v4586_v39, %s4497_s5 }
 0x225   :  { %244 = vrot.lane.b32.xlu1 %v4586_v39, %s4498_s6 }
 0x287   :  { %v4606_v42 = vpop.permute.xlu1 %157 }
 0x288   :  { %396 = vrot.lane.b32.xlu1 %v4606_v42, %s4498_s6  ;;  %v4610_v43 = vpop.permute.xlu0 %155 }
 0x289   :  { %320 = vrot.lane.b32.xlu0 %v4610_v43, %s4498_s6 }
 0x28b   :  { %v4614_v44 = vpop.permute.xlu1 %159 }
 0x28c   :  { %v4616_v45 = vpop.permute.xlu0 %163 }
 0x28d   :  { %472 = vrot.lane.b32.xlu0 %v4614_v44, %s4498_s6 }
 0x28f   :  { %v4620_v46 = vpop.permute.xlu1 %161 }
 0x290   :  { %548 = vrot.lane.b32.xlu1 %v4620_v46, %s4498_s6  ;;  %v168_v47 = vpop.permute.xlu0 %167 }
 0x291   :  { %624 = vrot.lane.b32.xlu0 %v4616_v45, %s4498_s6  ;;  %3871 = vmatpush3.xpose.msk.msra.mxu1 %vm169_vm2, %v168_v47 }
 0x292   :  { %3875 = vmatprep.subr.mxu1 %v4493_v37 }
 0x293   :  { %v4628_v48 = vpop.permute.xlu1 %165 }
 0x294   :  { %700 = vrot.lane.b32.xlu1 %v4628_v48, %s4498_s6  ;;  %3873 = vmatmul.mubr.msk.f32.vlgmr.msra.gmra.mrb[2].mxu1 %vm169_vm2, %v4588_v41 }
 0x295   :  { %3877 = vmatprep.mubr.msk.f32.mxu1 %vm4494_vm1, %v4493_v37 }
 0x297   :  { %v245_v49 = vpop.permute.xlu1 %244 }
 0x298   :  { %3876 = vmatpush3.xpose.msk.msra.mxu1 %vm169_vm2, %v245_v49 }
 0x299   :  { %3885 = vmatprep.subr.mxu1 %v4493_v37 }
 0x29b   :  { %3878 = vmatmul.mubr.msk.f32.vlgmr.msra.gmra.mrb[4].mxu1 %vm169_vm2, %v4586_v39 }
 0x29c   :  { %3887 = vmatprep.mubr.msk.f32.mxu1 %vm4494_vm1, %v4493_v37 }
 0x2fa   :  { %v397_v50 = vpop.permute.xlu1 %396 }
 0x2fb   :  { %3886 = vmatpush3.xpose.msk.msra.mxu1 %vm169_vm2, %v397_v50  ;;  %v321_v51 = vpop.permute.xlu0 %320 }
 0x2fc   :  { %3881 = vmatpush3.xpose.msk.msra.mxu0 %vm169_vm2, %v321_v51  ;;  %3895 = vmatprep.subr.mxu1 %v4493_v37 }
 0x2fd   :  { %3890 = vmatprep.subr.mxu0 %v4493_v37 }
 0x2fe   :  { %3888 = vmatmul.mubr.msk.f32.vlgmr.msra.gmra.mrb[6].mxu1 %vm169_vm2, %v4606_v42 }
 0x2ff   :  { %3883 = vmatmul.mubr.msk.f32.vlgmr.msra.gmra.mrb[0].mxu0 %vm169_vm2, %v4610_v43  ;;  %v473_v52 = vpop.permute.xlu0 %472  ;;  %3897 = vmatprep.mubr.msk.f32.mxu1 %vm4494_vm1, %v4493_v37 }
 0x300   :  { %3891 = vmatpush3.xpose.msk.msra.mxu0 %vm169_vm2, %v473_v52  ;;  %3892 = vmatprep.mubr.msk.f32.mxu0 %vm4494_vm1, %v4493_v37 }
 0x301   :  { %3900 = vmatprep.subr.mxu0 %v4493_v37 }
 0x302   :  { %v549_v53 = vpop.permute.xlu1 %548 }
 0x303   :  { %3893 = vmatmul.mubr.msk.f32.vlgmr.msra.gmra.mrb[2].mxu0 %vm169_vm2, %v4614_v44  ;;  %3896 = vmatpush3.xpose.msk.msra.mxu1 %vm169_vm2, %v549_v53  ;;  %v625_v54 = vpop.permute.xlu0 %624 }
 0x304   :  { %3901 = vmatpush3.xpose.msk.msra.mxu0 %vm169_vm2, %v625_v54  ;;  %3902 = vmatprep.mubr.msk.f32.mxu0 %vm4494_vm1, %v4493_v37 }
 0x305   :  { %3905 = vmatprep.subr.mxu1 %v4493_v37  ;;  %3910 = vmatprep.subr.mxu0 %v4493_v37 }
 0x306   :  { %v701_v55 = vpop.permute.xlu1 %700  ;;  %3898 = vmatmul.mubr.msk.f32.vlgmr.msra.gmra.mrb[8].mxu1 %vm169_vm2, %v4620_v46 }
 0x307   :  { %3903 = vmatmul.mubr.msk.f32.vlgmr.msra.gmra.mrb[4].mxu0 %vm169_vm2, %v4616_v45  ;;  %3906 = vmatpush3.xpose.msk.msra.mxu1 %vm169_vm2, %v701_v55 }
 0x308   :  { %3907 = vmatprep.mubr.msk.f32.mxu1 %vm4494_vm1, %v4493_v37  ;;  %3915 = vmatprep.subr.mxu1 %v4493_v37 }
 0x309   :  { %3912 = vmatprep.mubr.msk.f32.mxu0 %vm4494_vm1, %v4493_v37 }
 0x30a   :  { %3908 = vmatmul.mubr.msk.f32.vlgmr.msra.gmra.mrb[10].mxu1 %vm169_vm2, %v4628_v48 }
 0x30b   :  { %3917 = vmatprep.mubr.msk.f32.mxu1 %vm4494_vm1, %v4493_v37 }
 0x367   :  { %v240_v57 = vpop.f32.mrb[2].mxu1 }
 0x368   :  { %v241_v58 = vadd.f32 %v240_v57, %v4681_v56  ;;  %v3874_v59 = vpop.f32.mrb[3].mxu1 }
 0x36a   :  { %v776_v60 = vsel %vm169_vm2, %v241_v58, -inf }
 0x36b   :  { %777 = vmax.xlane.f32.xlu0 %v776_v60 }
 0x36e   :  { %v316_v62 = vpop.f32.mrb[4].mxu1 }
 0x36f   :  { %v317_v63 = vadd.f32 %v316_v62, %v4688_v61  ;;  %v3879_v2 = vpop.f32.mrb[5].mxu1 }
 0x371   :  { %v779_v3 = vsel %vm169_vm2, %v317_v63, -inf }
 0x372   :  { %780 = vmax.xlane.f32.xlu1 %v779_v3 }
 0x3d1   :  { %v468_v4 = vpop.f32.mrb[6].mxu1 }
 0x3d2   :  { %v469_v5 = vadd.f32 %v468_v4, %v4688_v61  ;;  %v392_v6 = vpop.f32.mrb[0].mxu0  ;;  %v3889_v7 = vpop.f32.mrb[7].mxu1 }
 0x3d3   :  { %v3884_v8 = vpop.f32.mrb[1].mxu0  ;;  %v393_v9 = vadd.f32 %v392_v6, %v4681_v56 }
 0x3d4   :  { %v785_v10 = vsel %vm169_vm2, %v469_v5, -inf }
 0x3d5   :  { %786 = vmax.xlane.f32.xlu0 %v785_v10  ;;  %v782_v17 = vsel %vm169_vm2, %v393_v9, -inf }
 0x3d6   :  { %v544_v11 = vpop.f32.mrb[2].mxu0 }
 0x3d7   :  { %v3894_v12 = vpop.f32.mrb[3].mxu0  ;;  %v545_v13 = vadd.f32 %v544_v11, %v4681_v56 }
 0x3d9   :  { %v620_v19 = vpop.f32.mrb[8].mxu1  ;;  %783 = vmax.xlane.f32.xlu0 %v782_v17  ;;  %v788_v26 = vsel %vm169_vm2, %v545_v13, -inf }
 0x3da   :  { %v621_v20 = vadd.f32 %v620_v19, %v4688_v61  ;;  %v3899_v21 = vpop.f32.mrb[9].mxu1  ;;  %v696_v22 = vpop.f32.mrb[4].mxu0 }
 0x3db   :  { %v3904_v23 = vpop.f32.mrb[5].mxu0  ;;  %v697_v24 = vadd.f32 %v696_v22, %v4681_v56 }
 0x3dc   :  { %v791_v25 = vsel %vm169_vm2, %v621_v20, -inf }
 0x3dd   :  { %792 = vmax.xlane.f32.xlu1 %v791_v25  ;;  %v772_v27 = vpop.f32.mrb[10].mxu1  ;;  %789 = vmax.xlane.f32.xlu0 %v788_v26  ;;  %v794_v31 = vsel %vm169_vm2, %v697_v24, -inf }
 0x3de   :  { %v773_v28 = vadd.f32 %v772_v27, %v4688_v61  ;;  %v3909_v29 = vpop.f32.mrb[11].mxu1 }
 0x3e0   :  { %v797_v30 = vsel %vm169_vm2, %v773_v28, -inf }
 0x3e1   :  { %798 = vmax.xlane.f32.xlu1 %v797_v30  ;;  %795 = vmax.xlane.f32.xlu0 %v794_v31 }
 0x3f2   :  { %964 = vrot.lane.b32.xlu1 %v4586_v39, %s4499_s1 }
 0x3f6   :  { %1040 = vrot.lane.b32.xlu1 %v4610_v43, %s4499_s1 }
 0x3f7   :  { %888 = vrot.lane.b32.xlu0 %v4588_v41, %s4499_s1 }
 0x3f8   :  { %v778_v32 = vpop.xlane.xlu0 %777 }
 0x3f9   :  { %v800_v33 = vsub.f32 %v241_v58, %v778_v32 }
 0x3fa   :  { %1116 = vrot.lane.b32.xlu1 %v4606_v42, %s4499_s1 }
 0x3fb   :  { %v808_v34 = vmul.f32 1.442695, %v800_v33 }
 0x3fd   :  { %4397 = vpow2.f32 %v808_v34 }
 0x3ff   :  { %v781_v35 = vpop.xlane.xlu1 %780 }
 0x400   :  { %v801_v36 = vsub.f32 %v317_v63, %v781_v35 }
 0x402   :  { %v810_v38 = vmul.f32 1.442695, %v801_v36 }
 0x404   :  { %4399 = vpow2.f32 %v810_v38 }
 0x407   :  { %v4712_v40 = vpop.eup %4397 }
 0x408   :  { %v824_v39 = vsel %vm169_vm2, %v4712_v40, 0.0 }
 0x40e   :  { %v4716_v43 = vpop.eup %4399 }
 0x40f   :  { %v827_v41 = vsel %vm169_vm2, %v4716_v43, 0.0 }
 0x416   :  { %825 = vadd.xlane.f32.xlu0 %v824_v39 }
 0x41e   :  { %828 = vadd.xlane.f32.xlu1 %v827_v41 }
 0x462   :  { %v787_v42 = vpop.xlane.xlu0 %786 }
 0x463   :  { %v803_v47 = vsub.f32 %v469_v5, %v787_v42 }
 0x465   :  { %v814_v49 = vmul.f32 1.442695, %v803_v47 }
 0x466   :  { %v784_v50 = vpop.xlane.xlu0 %783 }
 0x467   :  { %4401 = vpow2.f32 %v814_v49  ;;  %v802_v51 = vsub.f32 %v393_v9, %v784_v50 }
 0x469   :  { %v812_v52 = vmul.f32 1.442695, %v802_v51 }
 0x46a   :  { %v793_v53 = vpop.xlane.xlu1 %792  ;;  %v790_v54 = vpop.xlane.xlu0 %789 }
 0x46b   :  { %4403 = vpow2.f32 %v812_v52  ;;  %v805_v55 = vsub.f32 %v621_v20, %v793_v53  ;;  %v804_v57 = vsub.f32 %v545_v13, %v790_v54  ;;  %v4278_v53 = vpack.i.bf16 %v4565_v18, %v4558_v16 }
 0x46c   :  { %v4273_v54 = vpack.i.bf16 %v4553_v15, %v4548_v14 }
 0x46d   :  { %v818_v58 = vmul.f32 1.442695, %v805_v55  ;;  %v816_v59 = vmul.f32 1.442695, %v804_v57 }
 0x46e   :  { %v799_v60 = vpop.xlane.xlu1 %798  ;;  %v796_v62 = vpop.xlane.xlu0 %795 }
 0x46f   :  { %4405 = vpow2.f32 %v818_v58  ;;  %v807_v63 = vsub.f32 %v773_v28, %v799_v60  ;;  %v806_v2 = vsub.f32 %v697_v24, %v796_v62 }
 0x470   :  { %4407 = vpow2.f32 %v816_v59 }
 0x471   :  { %v4720_v3 = vpop.eup %4401  ;;  %v822_v4 = vmul.f32 1.442695, %v807_v63  ;;  %v820_v5 = vmul.f32 1.442695, %v806_v2 }
 0x472   :  { %v965_v6 = vpop.permute.xlu1 %964  ;;  %v889_v7 = vpop.permute.xlu0 %888  ;;  %v833_v8 = vsel %vm169_vm2, %v4720_v3, 0.0 }
 0x473   :  { %4409 = vpow2.f32 %v822_v4  ;;  %3916 = vmatpush3.msra.mxu1 %v965_v6  ;;  %834 = vadd.xlane.f32.xlu1 %v833_v8 }
 0x474   :  { %4411 = vpow2.f32 %v820_v5  ;;  %3911 = vmatpush3.msra.mxu0 %v889_v7  ;;  %3925 = vmatprep.subr.mxu1 %v4493_v37 }
 0x475   :  { %v4725_v9 = vpop.eup %4403  ;;  %3920 = vmatprep.subr.mxu0 %v4493_v37 }
 0x476   :  { %v830_v10 = vsel %vm169_vm2, %v4725_v9, 0.0  ;;  %v1041_v23 = vpop.permute.xlu1 %1040 }
 0x477   :  { %831 = vadd.xlane.f32.xlu0 %v830_v10 }
 0x479   :  { %v4730_v11 = vpop.eup %4405 }
 0x47a   :  { %v4732_v12 = vpop.eup %4407  ;;  %v839_v13 = vsel %vm169_vm2, %v4730_v11, 0.0  ;;  %v1117_v25 = vpop.permute.xlu1 %1116 }
 0x47b   :  { %840 = vadd.xlane.f32.xlu1 %v839_v13  ;;  %v836_v17 = vsel %vm169_vm2, %v4732_v12, 0.0 }
 0x47c   :  { %837 = vadd.xlane.f32.xlu0 %v836_v17 }
 0x47d   :  { %v4738_v19 = vpop.eup %4409 }
 0x47e   :  { %v4740_v20 = vpop.eup %4411  ;;  %v845_v21 = vsel %vm169_vm2, %v4738_v19, 0.0 }
 0x47f   :  { %846 = vadd.xlane.f32.xlu1 %v845_v21  ;;  %v842_v22 = vsel %vm169_vm2, %v4740_v20, 0.0 }
 0x480   :  { %843 = vadd.xlane.f32.xlu0 %v842_v22 }
 0x490   :  { %1268 = vrot.lane.b32.xlu1 %v4620_v46, %s4499_s1 }
 0x494   :  { %1420 = vrot.lane.b32.xlu1 %v4628_v48, %s4499_s1 }
 0x496   :  { %1192 = vrot.lane.b32.xlu0 %v4614_v44, %s4499_s1 }
 0x498   :  { %4279 = vrot.lane.b32.xlu1 %v4278_v53, %s4500_s11 }
 0x49a   :  { %1344 = vrot.lane.b32.xlu0 %v4616_v45, %s4499_s1 }
 0x49e   :  { %4274 = vrot.lane.b32.xlu0 %v4273_v54, %s4500_s11 }
 0x4a3   :  { %v826_v24 = vpop.xlane.xlu0 %825 }
 0x4a4   :  { %4413 = vrcp.f32 %v826_v24 }
 0x4ab   :  { %v829_v26 = vpop.xlane.xlu1 %828 }
 0x4ac   :  { %4415 = vrcp.f32 %v829_v26 }
 0x4ae   :  { %v4414_v27 = vpop.eup %4413 }
 0x4af   :  { %v856_v28 = vmul.f32 %v4414_v27, %v826_v24 }
 0x4b1   :  { %v864_v29 = vsub.f32 2.0, %v856_v28 }
 0x4b3   :  { %v872_v30 = vmul.f32 %v4414_v27, %v864_v29 }
 0x4b5   :  { %v880_v46 = vmul.f32 %v4712_v40, %v872_v30 }
 0x4b6   :  { %v4416_v31 = vpop.eup %4415 }
 0x4b7   :  { %v857_v48 = vmul.f32 %v4416_v31, %v829_v26  ;;  %3913 = vmatmul.mubr.msk.f32.vlgmr.msra.gmra.mrb[6].mxu0 %vm169_vm2, %v880_v46 }
 0x4b8   :  { %3921 = vmatpush3.msra.mxu0 %v1041_v23  ;;  %3922 = vmatprep.mubr.msk.f32.mxu0 %vm4494_vm1, %v4493_v37 }
 0x4b9   :  { %v865_v44 = vsub.f32 2.0, %v857_v48  ;;  %3930 = vmatprep.subr.mxu0 %v4493_v37 }
 0x4bb   :  { %v873_v45 = vmul.f32 %v4416_v31, %v865_v44 }
 0x4bd   :  { %v881_v32 = vmul.f32 %v4716_v43, %v873_v45 }
 0x4bf   :  { %3918 = vmatmul.mubr.msk.f32.vlgmr.msra.gmra.mrb[12].mxu1 %vm169_vm2, %v881_v32 }
 0x4c0   :  { %3926 = vmatpush3.msra.mxu1 %v1117_v25  ;;  %3927 = vmatprep.mubr.msk.f32.mxu1 %vm4494_vm1, %v4493_v37 }
 0x4c1   :  { %3935 = vmatprep.subr.mxu1 %v4493_v37 }
 0x500   :  { %v835_v33 = vpop.xlane.xlu1 %834 }
 0x501   :  { %4417 = vrcp.f32 %v835_v33 }
 0x504   :  { %v832_v34 = vpop.xlane.xlu0 %831 }
 0x505   :  { %4419 = vrcp.f32 %v832_v34 }
 0x508   :  { %v841_v35 = vpop.xlane.xlu1 %840 }
 0x509   :  { %4421 = vrcp.f32 %v841_v35  ;;  %v838_v36 = vpop.xlane.xlu0 %837 }
 0x50a   :  { %4423 = vrcp.f32 %v838_v36 }
 0x50b   :  { %v4418_v38 = vpop.eup %4417 }
 0x50c   :  { %v859_v40 = vmul.f32 %v4418_v38, %v835_v33  ;;  %v847_v39 = vpop.xlane.xlu1 %846 }
 0x50d   :  { %4425 = vrcp.f32 %v847_v39  ;;  %v844_v43 = vpop.xlane.xlu0 %843 }
 0x50e   :  { %v867_v41 = vsub.f32 2.0, %v859_v40  ;;  %4427 = vrcp.f32 %v844_v43 }
 0x50f   :  { %v4420_v42 = vpop.eup %4419 }
 0x510   :  { %v875_v47 = vmul.f32 %v4418_v38, %v867_v41  ;;  %v858_v49 = vmul.f32 %v4420_v42, %v832_v34  ;;  %v1269_v59 = vpop.permute.xlu1 %1268 }
 0x511   :  { %v1193_v16 = vpop.permute.xlu0 %1192 }
 0x512   :  { %v883_v50 = vmul.f32 %v4720_v3, %v875_v47  ;;  %v866_v51 = vsub.f32 2.0, %v858_v49 }
 0x513   :  { %v4422_v52 = vpop.eup %4421 }
 0x514   :  { %v4424_v55 = vpop.eup %4423  ;;  %v874_v57 = vmul.f32 %v4420_v42, %v866_v51  ;;  %v861_v58 = vmul.f32 %v4422_v52, %v841_v35  ;;  %3928 = vmatmul.mubr.msk.f32.vlgmr.msra.gmra.mrb[14].mxu1 %vm169_vm2, %v883_v50  ;;  %v1421_v13 = vpop.permute.xlu1 %1420 }
 0x515   :  { %v860_v60 = vmul.f32 %v4424_v55, %v838_v36  ;;  %3936 = vmatpush3.msra.mxu1 %v1269_v59  ;;  %3937 = vmatprep.mubr.msk.f32.mxu1 %vm4494_vm1, %v4493_v37  ;;  %v1345_v21 = vpop.permute.xlu0 %1344 }
 0x516   :  { %v882_v62 = vmul.f32 %v4725_v9, %v874_v57  ;;  %v869_v63 = vsub.f32 2.0, %v861_v58  ;;  %3945 = vmatprep.subr.mxu1 %v4493_v37  ;;  %v24_v58 = vld [vmem:[%s5173_s2 + $0x63] ss:$0 sm:$0xff] }
 0x517   :  { %v4426_v14 = vpop.eup %4425  ;;  %v868_v15 = vsub.f32 2.0, %v860_v60 }
 0x518   :  { %v4428_v18 = vpop.eup %4427  ;;  %v877_v2 = vmul.f32 %v4422_v52, %v869_v63  ;;  %v863_v3 = vmul.f32 %v4426_v14, %v847_v39  ;;  %3923 = vmatmul.mubr.msk.f32.vlgmr.msra.gmra.mrb[8].mxu0 %vm169_vm2, %v882_v62 }
 0x519   :  { %v876_v4 = vmul.f32 %v4424_v55, %v868_v15  ;;  %v862_v5 = vmul.f32 %v4428_v18, %v844_v43  ;;  %3931 = vmatpush3.msra.mxu0 %v1193_v16  ;;  %3932 = vmatprep.mubr.msk.f32.mxu0 %vm4494_vm1, %v4493_v37  ;;  %v4275_v25 = vpop.permute.xlu0 %4274 }
 0x51a   :  { %v885_v6 = vmul.f32 %v4730_v11, %v877_v2  ;;  %v871_v7 = vsub.f32 2.0, %v863_v3  ;;  %3940 = vmatprep.subr.mxu0 %v4493_v37  ;;  %v4277_v27 = vunpack.i.h.bf16 %v4275_v25  ;;  %v1665_v2 = vld [vmem:[%s5173_s2 + $0x38] sm:$0xff] }
 0x51b   :  { %v884_v8 = vmul.f32 %v4732_v12, %v876_v4  ;;  %v870_v9 = vsub.f32 2.0, %v862_v5  ;;  %v4280_v12 = vpop.permute.xlu1 %4279 }
 0x51c   :  { %v879_v10 = vmul.f32 %v4426_v14, %v871_v7  ;;  %3938 = vmatmul.mubr.msk.f32.vlgmr.msra.gmra.mrb[16].mxu1 %vm169_vm2, %v885_v6  ;;  %v4282_v23 = vunpack.i.h.bf16 %v4280_v12  ;;  %v4281_v24 = vunpack.i.l.bf16 %v4280_v12 }
 0x51d   :  { %v878_v17 = vmul.f32 %v4428_v18, %v870_v9  ;;  %3933 = vmatmul.mubr.msk.f32.vlgmr.msra.gmra.mrb[10].mxu0 %vm169_vm2, %v884_v8  ;;  %3946 = vmatpush3.msra.mxu1 %v1421_v13 }
 0x51e   :  { %v887_v22 = vmul.f32 %v4738_v19, %v879_v10  ;;  %3941 = vmatpush3.msra.mxu0 %v1345_v21  ;;  %3942 = vmatprep.mubr.msk.f32.mxu0 %vm4494_vm1, %v4493_v37  ;;  %v4276_v19 = vunpack.i.l.bf16 %v4275_v25  ;;  %v4151_v29 = vpack.c.bf16 %v4282_v23, %v4281_v24  ;;  %v1663_v21 = vld [vmem:[%s5173_s2 + $0x8] sm:$0xff]  ;;  %v17_v23 = vld [vmem:[%s5171_s0 + $0x10] sm:$0xff] }
 0x51f   :  { %v886_v11 = vmul.f32 %v4740_v20, %v878_v17  ;;  %3947 = vmatprep.mubr.msk.f32.mxu1 %vm4494_vm1, %v4493_v37 }
 0x520   :  { %3948 = vmatmul.mubr.msk.f32.vlgmr.msra.gmra.mrb[18].mxu1 %vm169_vm2, %v887_v22  ;;  %v4147_v30 = vpack.c.bf16 %v4277_v27, %v4276_v19  ;;  %v1664_v22 = vld [vmem:[%s5173_s2 + $0x20] sm:$0xff] }
 0x521   :  { %3943 = vmatmul.mubr.msk.f32.vlgmr.msra.gmra.mrb[12].mxu0 %vm169_vm2, %v886_v11  ;;  %v4839_v11 = vpack.i.bf16 %v1664_v22, %v1663_v21  ;;  %v4155_v12 = vpack.c.bf16 %v1664_v22, %v1663_v21 }
 0x522   :  { %4148 = vmatprep.subr.bf16.mxu0 %v4147_v30 }
 0x523   :  { %4150 = vmatpush3.bf16.msra.mxu0 %v4147_v30  ;;  %4156 = vmatprep.subr.bf16.mxu1 %v4155_v12 }
 0x524   :  { %4152 = vmatprep.subr.bf16.mxu0 %v4151_v29  ;;  %4158 = vmatpush3.bf16.msra.mxu1 %v4155_v12 }
 0x527   :  { %4154 = vmatpush3.bf16.msra.mxu0 %v4151_v29 }
 0x58a   :  { %v960_v26 = vpop.f32.mrb[6].mxu0 }
 0x58b   :  { %v3914_v28 = vpop.f32.mrb[7].mxu0 }
 0x592   :  { %v1036_v20 = vpop.f32.mrb[12].mxu1 }
 0x593   :  { %v3919_v46 = vpop.f32.mrb[13].mxu1 }
 0x5e7   :  { %v1188_v31 = vpop.f32.mrb[14].mxu1 }
 0x5e8   :  { %1500 = vrot.lane.b32.xlu1 %v1188_v31, %s4501_s12  ;;  %v3929_v48 = vpop.f32.mrb[15].mxu1 }
 0x5eb   :  { %v1112_v44 = vpop.f32.mrb[8].mxu0 }
 0x5ec   :  { %1498 = vrot.lane.b32.xlu0 %v1112_v44, %s4501_s12  ;;  %v3924_v45 = vpop.f32.mrb[9].mxu0 }
 0x5ef   :  { %v1340_v32 = vpop.f32.mrb[16].mxu1 }
 0x5f0   :  { %v1264_v33 = vpop.f32.mrb[10].mxu0  ;;  %1508 = vrot.lane.b32.xlu1 %v1340_v32, %s4502_s13  ;;  %v3939_v34 = vpop.f32.mrb[17].mxu1 }
 0x5f1   :  { %1506 = vrot.lane.b32.xlu0 %v1264_v33, %s4502_s13  ;;  %v3934_v35 = vpop.f32.mrb[11].mxu0 }
 0x5f2   :  { %v18_v35 = vld [vmem:[%s5171_s0 + $0x18] sm:$0xff] }
 0x5f3   :  { %v1492_v36 = vpop.f32.mrb[18].mxu1 }
 0x5f4   :  { %v1416_v38 = vpop.f32.mrb[12].mxu0  ;;  %1516 = vrot.lane.b32.xlu1 %v1492_v36, %s4503_s14  ;;  %v3949_v40 = vpop.f32.mrb[19].mxu1  ;;  %v25_v36 = vld [vmem:[%s5173_s2 + $0x64] ss:$0 sm:$0xff] }
 0x5f5   :  { %1514 = vrot.lane.b32.xlu0 %v1416_v38, %s4503_s14  ;;  %v3944_v39 = vpop.f32.mrb[13].mxu0  ;;  %v19_v40 = vld [vmem:[%s5171_s0 + $0x20] sm:$0xff] }
 0x65a   :  { %v1501_v43 = vpop.permute.xlu1 %1500 }
 0x65b   :  { %v1521_v49 = vsel %vm169_vm2, %v1036_v20, %v1501_v43 }
 0x65e   :  { %v1499_v41 = vpop.permute.xlu0 %1498 }
 0x65f   :  { %v1520_v50 = vsel %vm169_vm2, %v960_v26, %v1499_v41  ;;  %v20_v41 = vld [vmem:[%s5171_s0 + $0x28] sm:$0xff] }
 0x662   :  { %v1509_v42 = vpop.permute.xlu1 %1508 }
 0x663   :  { %v1507_v47 = vpop.permute.xlu0 %1506  ;;  %v1524_v51 = vsel %vm1522_vm3, %v1521_v49, %v1509_v42  ;;  %v26_v42 = vld [vmem:[%s5173_s2 + $0x65] ss:$0 sm:$0xff] }
 0x664   :  { %v1523_v53 = vsel %vm1522_vm3, %v1520_v50, %v1507_v47 }
 0x666   :  { %v1517_v52 = vpop.permute.xlu1 %1516 }
 0x667   :  { %v1527_v54 = vsel %vm1525_vm4, %v1524_v51, %v1517_v52  ;;  %v1515_v55 = vpop.permute.xlu0 %1514  ;;  %v4504_v51 = vmov 0.0|0.0   ;;  %v28_v52 = vld [vmem:[%s5173_s2 + $0x67] ss:$0 sm:$0xff] }
 0x668   :  { %v1526_v57 = vsel %vm1525_vm4, %v1523_v53, %v1515_v55 }
 0x669   :  { %3958 = vmatprep.mubr.msk.f32.mxu0 %vm36_vm0, %v1526_v57 }
 0x66a   :  { %3959 = vmatmul.mubr.msk.f32.vlgmr.msra.gmra.mrb[14].mxu0 %vm36_vm0, %v1527_v54 }
 0x66b   :  { %3980 = vmatprep.mubr.msk.f32.mxu0 %vm36_vm0, %v17_v23 }
 0x73d   :  { %v3960_v59 = vpop.f32.mrb[14].mxu0 }
 0x73e   :  { %v1630_v60 = vadd.f32 %v3960_v59, %v4535_v1  ;;  %v1620_v62 = vpop.f32.mrb[15].mxu0 }
 0x73f   :  { %v1629_v63 = vadd.f32 %v1620_v62, %v4530_v0  ;;  %v1666_v0 = vld [vmem:[%s5173_s2 + $0x50] sm:$0xff] }
 0x740   :  { %v4811_v14 = vadd.f32 %v1630_v60, %v24_v58  ;;  %v4825_v1 = vpack.i.bf16 %v1666_v0, %v1665_v2  ;;  %v4159_v24 = vpack.c.bf16 %v1666_v0, %v1665_v2 }
 0x741   :  { %v4813_v15 = vadd.f32 %v1629_v63, %v24_v58 }
 0x742   :  { %v1636_v16 = vsel %vm36_vm0, %v4811_v14, 0.0  ;;  %4160 = vmatprep.subr.bf16.mxu1 %v4159_v24 }
 0x743   :  { %1637 = vadd.xlane.f32.xlu1 %v1636_v16  ;;  %v1633_v18 = vsel %vm36_vm0, %v4813_v15, 0.0  ;;  %4162 = vmatpush3.bf16.msra.mxu1 %v4159_v24 }
 0x744   :  { %1634 = vadd.xlane.f32.xlu0 %v1633_v18  ;;  %4171 = vmatprep.subr.bf16.mxu1 %v4504_v51  ;;  %v27_v18 = vld [vmem:[%s5173_s2 + $0x66] ss:$0 sm:$0xff] }
 0x754   :  { %4289 = vrot.lane.b32.xlu1 %v4825_v1, %s4498_s6 }
 0x7d0   :  { %v1638_v3 = vpop.xlane.xlu1 %1637 }
 0x7d1   :  { %v1640_v4 = vmul.f32 0.03125, %v1638_v3  ;;  %v1635_v5 = vpop.xlane.xlu0 %1634 }
 0x7d2   :  { %v1639_v6 = vmul.f32 0.03125, %v1635_v5 }
 0x7d3   :  { %v1642_v7 = vsub.f32 %v4811_v14, %v1640_v4 }
 0x7d4   :  { %v1641_v8 = vsub.f32 %v4813_v15, %v1639_v6  ;;  %v4290_v28 = vpop.permute.xlu1 %4289 }
 0x7d5   :  { %v1644_v9 = vmul.f32 %v1642_v7, %v1642_v7  ;;  %v4292_v20 = vunpack.i.h.bf16 %v4290_v28  ;;  %v4291_v46 = vunpack.i.l.bf16 %v4290_v28 }
 0x7d6   :  { %v1643_v13 = vmul.f32 %v1641_v8, %v1641_v8 }
 0x7d7   :  { %v1648_v10 = vsel %vm36_vm0, %v1644_v9, 0.0  ;;  %v4167_v32 = vpack.c.bf16 %v4292_v20, %v4291_v46 }
 0x7d8   :  { %1649 = vadd.xlane.f32.xlu0 %v1648_v10  ;;  %v1645_v17 = vsel %vm36_vm0, %v1643_v13, 0.0 }
 0x7dc   :  { %1646 = vadd.xlane.f32.xlu0 %v1645_v17 }
 0x7f2   :  { %4284 = vrot.lane.b32.xlu0 %v4839_v11, %s4498_s6 }
 0x865   :  { %v1650_v25 = vpop.xlane.xlu0 %1649 }
 0x866   :  { %v1652_v26 = vmul.f32 0.03125, %v1650_v25 }
 0x868   :  { %v1654_v27 = vadd.f32 1e-05, %v1652_v26 }
 0x869   :  { %v1647_v19 = vpop.xlane.xlu0 %1646 }
 0x86a   :  { %4429 = vrsqrt.f32 %v1654_v27  ;;  %v1651_v29 = vmul.f32 0.03125, %v1647_v19 }
 0x86c   :  { %v1653_v30 = vadd.f32 1e-05, %v1651_v29 }
 0x86d   :  { %v4285_v31 = vpop.permute.xlu0 %4284 }
 0x86e   :  { %4431 = vrsqrt.f32 %v1653_v30  ;;  %v4287_v48 = vunpack.i.h.bf16 %v4285_v31  ;;  %v4286_v44 = vunpack.i.l.bf16 %v4285_v31 }
 0x870   :  { %v4163_v45 = vpack.c.bf16 %v4287_v48, %v4286_v44 }
 0x872   :  { %4164 = vmatprep.subr.bf16.mxu0 %v4163_v45 }
 0x873   :  { %4166 = vmatpush3.bf16.msra.mxu0 %v4163_v45 }
 0x874   :  { %v4430_v33 = vpop.eup %4429  ;;  %4168 = vmatprep.subr.bf16.mxu0 %v4167_v32 }
 0x875   :  { %v1658_v34 = vmul.f32 %v4430_v33, %v1642_v7 }
 0x877   :  { %4170 = vmatpush3.bf16.msra.mxu0 %v4167_v32  ;;  %v1660_v43 = vmul.f32 %v1658_v34, %v25_v36 }
 0x878   :  { %v4432_v38 = vpop.eup %4431  ;;  %4175 = vmatprep.subr.bf16.mxu0 %v4504_v51 }
 0x879   :  { %v1657_v39 = vmul.f32 %v4432_v38, %v1641_v8  ;;  %v1662_v50 = vadd.f32 %v1660_v43, %v26_v42 }
 0x87a   :  { %3981 = vmatmul.mubr.msk.f32.vlgmr.msra.gmra.mrb[16].mxu0 %vm36_vm0, %v18_v35 }
 0x87b   :  { %3983 = vmatprep.mubr.msk.f32.mxu0 %vm36_vm0, %v19_v40  ;;  %v1659_v47 = vmul.f32 %v1657_v39, %v25_v36 }
 0x87d   :  { %v1661_v49 = vadd.f32 %v1659_v47, %v26_v42 }
 0x87e   :  { %3984 = vmatmul.mubr.msk.f32.gmra.mrb[18].mxu0 %vm36_vm0, %v20_v41 }
 0x87f   :  { %3969 = vmatprep.mubr.msk.f32.mxu1 %vm36_vm0, %v1661_v49  ;;  %3997 = vmatprep.mubr.msk.f32.mxu0 %vm4494_vm1, %v4493_v37 }
 0x880   :  { %3970 = vmatmul.mubr.msk.f32.vlgmr.msra.gmra.mrb[20].mxu1 %vm36_vm0, %v1662_v50 }
 0x881   :  { %3990 = vmatprep.mubr.msk.f32.mxu1 %vm4494_vm1, %v4493_v37 }
 0x94d   :  { %v3982_v53 = vpop.f32.mrb[16].mxu0 }
 0x94e   :  { %v1848_v54 = vadd.f32 %v3982_v53, %v28_v52  ;;  %v1842_v55 = vpop.f32.mrb[17].mxu0 }
 0x94f   :  { %v1843_v57 = vadd.f32 %v1842_v55, %v28_v52 }
 0x951   :  { %v3985_v58 = vpop.f32.mrb[18].mxu0  ;;  %v4876_v59 = vpack.i.bf16 %v1848_v54, %v1843_v57  ;;  %v4172_v60 = vpack.c.bf16 %v1848_v54, %v1843_v57 }
 0x952   :  { %v1858_v63 = vadd.f32 %v3985_v58, %v28_v52  ;;  %v1852_v16 = vpop.f32.mrb[19].mxu0 }
 0x953   :  { %v1853_v2 = vadd.f32 %v1852_v16, %v28_v52  ;;  %v3971_v0 = vpop.f32.mrb[20].mxu1  ;;  %4304 = vrot.lane.b32.xlu0 %v4876_v59, %s4496_s4  ;;  %4294 = vrot.lane.b32.xlu1 %v4876_v59, %s4495_s30 }
 0x954   :  { %4174 = vmatpush3.bf16.xpose.msk.msra.mxu1 %vm4880_vm5, %v4172_v60  ;;  %v1739_v3 = vpop.f32.mrb[21].mxu1  ;;  %v1745_v7 = vadd.f32 %v3971_v0, %v27_v18 }
 0x955   :  { %v1740_v4 = vadd.f32 %v1739_v3, %v27_v18  ;;  %v4176_v5 = vpack.c.bf16 %v1858_v63, %v1853_v2  ;;  %v4893_v6 = vpack.i.bf16 %v1858_v63, %v1853_v2  ;;  %4179 = vmatprep.subr.bf16.mxu1 %v4504_v51 }
 0x957   :  { %4178 = vmatpush3.bf16.xpose.msk.msra.mxu0 %vm4880_vm5, %v4176_v5  ;;  %1863 = vrot.lane.b32.xlu0 %v1740_v4, %s4495_s30 }
 0x958   :  { %4299 = vrot.lane.b32.xlu1 %v4893_v6, %s4495_s30  ;;  %4183 = vmatprep.subr.bf16.mxu0 %v4504_v51 }
 0x95b   :  { %3991 = vmatmul.mubr.msk.f32.vlgmr.msra.gmra.mrb[22].mxu1 %vm169_vm2, %v1740_v4  ;;  %4314 = vrot.lane.b32.xlu0 %v4876_v59, %s4497_s5 }
 0x95c   :  { %4309 = vrot.lane.b32.xlu1 %v4893_v6, %s4496_s4  ;;  %4004 = vmatprep.mubr.msk.f32.mxu1 %vm4494_vm1, %v4493_v37 }
 0x95e   :  { %3998 = vmatmul.mubr.msk.f32.vlgmr.msra.gmra.mrb[20].mxu0 %vm169_vm2, %v1745_v7 }
 0x95f   :  { %1867 = vrot.lane.b32.xlu0 %v1740_v4, %s4496_s4  ;;  %4011 = vmatprep.mubr.msk.f32.mxu0 %vm4494_vm1, %v4493_v37 }
 0x960   :  { %1865 = vrot.lane.b32.xlu1 %v1745_v7, %s4495_s30 }
 0x963   :  { %1871 = vrot.lane.b32.xlu0 %v1740_v4, %s4497_s5 }
 0x964   :  { %4319 = vrot.lane.b32.xlu1 %v4893_v6, %s4497_s5 }
 0x967   :  { %1904 = vrot.lane.b32.xlu0 %v4681_v56, %s4495_s30 }
 0x968   :  { %1869 = vrot.lane.b32.xlu1 %v1745_v7, %s4496_s4 }
 0x96c   :  { %1873 = vrot.lane.b32.xlu1 %v1745_v7, %s4497_s5 }
 0x970   :  { %1984 = vrot.lane.b32.xlu1 %v4688_v61, %s4495_s30  ;;  %s4469_s30 = scalar_lea.vmem %s3649_s20, 256 }
 0x971   :  { %p4470_p0 = scmp.ne.s32.totalorder %s3649_s20, %s4469_s30  ;;  %p4475_p2 = scmp.lt.s32.totalorder %s4469_s30, %s4469_s30 }
 0x973   :  { %p4476_p3 = por %p4475_p2, %p4474_p1 }
 0x975   :  { %p4477_p4 = pnand %p4476_p3, %p4470_p0 }
 0x9c5   :  { %v4923_v8 = vpop.permute.xlu0 %4304  ;;  %v4925_v9 = vpop.permute.xlu1 %4294 }
 0x9c6   :  { %v4307_v10 = vunpack.i.h.bf16 %v4923_v8  ;;  %v4306_v13 = vunpack.i.l.bf16 %v4923_v8  ;;  %v4297_v17 = vunpack.i.h.bf16 %v4925_v9  ;;  %v4296_v21 = vunpack.i.l.bf16 %v4925_v9 }
 0x9c8   :  { %v4180_v56 = vpack.c.bf16 %v4297_v17, %v4296_v21  ;;  %v4188_v30 = vpack.c.bf16 %v4307_v10, %v4306_v13 }
 0x9c9   :  { %v1864_v22 = vpop.permute.xlu0 %1863 }
 0x9ca   :  { %v4931_v12 = vpop.permute.xlu1 %4299  ;;  %4182 = vmatpush3.bf16.xpose.msk.msra.mxu1 %vm4880_vm5, %v4180_v56 }
 0x9cb   :  { %v4302_v61 = vunpack.i.h.bf16 %v4931_v12  ;;  %v4301_v23 = vunpack.i.l.bf16 %v4931_v12  ;;  %4187 = vmatprep.subr.bf16.mxu1 %v4504_v51 }
 0x9cd   :  { %v4184_v24 = vpack.c.bf16 %v4302_v61, %v4301_v23  ;;  %v4938_v25 = vpop.permute.xlu0 %4314 }
 0x9ce   :  { %v4317_v26 = vunpack.i.h.bf16 %v4938_v25  ;;  %v4316_v27 = vunpack.i.l.bf16 %v4938_v25  ;;  %v4942_v19 = vpop.permute.xlu1 %4309 }
 0x9cf   :  { %v4312_v28 = vunpack.i.h.bf16 %v4942_v19  ;;  %v4311_v29 = vunpack.i.l.bf16 %v4942_v19  ;;  %4186 = vmatpush3.bf16.xpose.msk.msra.mxu0 %vm4880_vm5, %v4184_v24 }
 0x9d0   :  { %4191 = vmatprep.subr.bf16.mxu0 %v4504_v51  ;;  %v4196_v45 = vpack.c.bf16 %v4317_v26, %v4316_v27 }
 0x9d1   :  { %4005 = vmatmul.mubr.msk.f32.vlgmr.msra.gmra.mrb[24].mxu1 %vm169_vm2, %v1864_v22  ;;  %v4192_v46 = vpack.c.bf16 %v4312_v28, %v4311_v29  ;;  %v1868_v32 = vpop.permute.xlu0 %1867 }
 0x9d2   :  { %v1866_v20 = vpop.permute.xlu1 %1865  ;;  %4190 = vmatpush3.bf16.xpose.msk.msra.mxu1 %vm4880_vm5, %v4188_v30  ;;  %4018 = vmatprep.mubr.msk.f32.mxu1 %vm4494_vm1, %v4493_v37 }
 0x9d3   :  { %4195 = vmatprep.subr.bf16.mxu1 %v4504_v51 }
 0x9d5   :  { %v1872_v35 = vpop.permute.xlu0 %1871 }
 0x9d6   :  { %v4955_v31 = vpop.permute.xlu1 %4319  ;;  %4012 = vmatmul.mubr.msk.f32.vlgmr.msra.gmra.mrb[22].mxu0 %vm169_vm2, %v1866_v20 }
 0x9d7   :  { %v4322_v48 = vunpack.i.h.bf16 %v4955_v31  ;;  %v4321_v44 = vunpack.i.l.bf16 %v4955_v31  ;;  %4194 = vmatpush3.bf16.xpose.msk.msra.mxu0 %vm4880_vm5, %v4192_v46  ;;  %4025 = vmatprep.mubr.msk.f32.mxu0 %vm4494_vm1, %v4493_v37 }
 0x9d8   :  { %4199 = vmatprep.subr.bf16.mxu0 %v4504_v51 }
 0x9d9   :  { %4019 = vmatmul.mubr.msk.f32.vlgmr.msra.gmra.mrb[26].mxu1 %vm169_vm2, %v1868_v32  ;;  %v4200_v33 = vpack.c.bf16 %v4322_v48, %v4321_v44  ;;  %v1905_v38 = vpop.permute.xlu0 %1904 }
 0x9da   :  { %4198 = vmatpush3.bf16.xpose.msk.msra.mxu1 %vm4880_vm5, %v4196_v45  ;;  %4032 = vmatprep.mubr.msk.f32.mxu1 %vm4494_vm1, %v4493_v37  ;;  %v1870_v34 = vpop.permute.xlu1 %1869 }
 0x9db   :  { %4203 = vmatprep.subr.bf16.mxu1 %v4504_v51 }
 0x9de   :  { %4026 = vmatmul.mubr.msk.f32.vlgmr.msra.gmra.mrb[24].mxu0 %vm169_vm2, %v1870_v34  ;;  %v1874_v36 = vpop.permute.xlu1 %1873 }
 0x9df   :  { %4202 = vmatpush3.bf16.xpose.msk.msra.mxu0 %vm4880_vm5, %v4200_v33  ;;  %4039 = vmatprep.mubr.msk.f32.mxu0 %vm4494_vm1, %v4493_v37 }
 0x9e0   :  { %4209 = vmatprep.subr.bf16.mxu0 %v4504_v51 }
 0x9e1   :  { %4033 = vmatmul.mubr.msk.f32.vlgmr.msra.gmra.mrb[28].mxu1 %vm169_vm2, %v1872_v35 }
 0x9e2   :  { %4046 = vmatprep.mubr.msk.f32.mxu1 %vm4494_vm1, %v4493_v37  ;;  %v1985_v41 = vpop.permute.xlu1 %1984 }
 0x9e6   :  { %4040 = vmatmul.mubr.msk.f32.vlgmr.msra.gmra.mrb[26].mxu0 %vm169_vm2, %v1874_v36 }
 0x9e7   :  { %4060 = vmatprep.mubr.msk.f32.mxu0 %vm4494_vm1, %v4493_v37 }
 0xa2e   :  { %v1979_v40 = vpop.f32.mrb[22].mxu1 }
 0xa2f   :  { %v1980_v39 = vadd.f32 %v1979_v40, %v1905_v38  ;;  %v3992_v43 = vpop.f32.mrb[23].mxu1 }
 0xa31   :  { %v2059_v42 = vpop.f32.mrb[20].mxu0  ;;  %v2519_v47 = vsel %vm1522_vm3, %v1980_v39, -inf }
 0xa32   :  { %2520 = vmax.xlane.f32.xlu0 %v2519_v47  ;;  %v3999_v49 = vpop.f32.mrb[21].mxu0  ;;  %v2060_v50 = vadd.f32 %v2059_v42, %v1985_v41 }
 0xa34   :  { %v2522_v52 = vsel %vm1522_vm3, %v2060_v50, -inf }
 0xa35   :  { %2523 = vmax.xlane.f32.xlu1 %v2522_v52 }
 0xaa4   :  { %v2135_v53 = vpop.f32.mrb[24].mxu1 }
 0xaa5   :  { %v4006_v54 = vpop.f32.mrb[25].mxu1  ;;  %v2136_v60 = vadd.f32 %v2135_v53, %v1905_v38 }
 0xaa7   :  { %v2525_v2 = vsel %vm1522_vm3, %v2136_v60, -inf }
 0xaa9   :  { %v2211_v55 = vpop.f32.mrb[22].mxu0 }
 0xaaa   :  { %v2212_v57 = vadd.f32 %v2211_v55, %v1985_v41  ;;  %v4013_v58 = vpop.f32.mrb[23].mxu0 }
 0xaac   :  { %v2528_v62 = vsel %vm1522_vm3, %v2212_v57, -inf  ;;  %v2287_v63 = vpop.f32.mrb[26].mxu1 }
 0xaad   :  { %2529 = vmax.xlane.f32.xlu0 %v2528_v62  ;;  %v4020_v16 = vpop.f32.mrb[27].mxu1  ;;  %v2288_v18 = vadd.f32 %v2287_v63, %v1905_v38 }
 0xaaf   :  { %v2531_v7 = vsel %vm1522_vm3, %v2288_v18, -inf }
 0xab1   :  { %v2363_v0 = vpop.f32.mrb[24].mxu0  ;;  %2526 = vmax.xlane.f32.xlu0 %v2525_v2 }
 0xab2   :  { %v2364_v3 = vadd.f32 %v2363_v0, %v1985_v41  ;;  %v4027_v4 = vpop.f32.mrb[25].mxu0 }
 0xab4   :  { %v2534_v5 = vsel %vm1522_vm3, %v2364_v3, -inf  ;;  %v2439_v10 = vpop.f32.mrb[28].mxu1 }
 0xab5   :  { %2535 = vmax.xlane.f32.xlu1 %v2534_v5  ;;  %2532 = vmax.xlane.f32.xlu0 %v2531_v7  ;;  %v2440_v13 = vadd.f32 %v2439_v10, %v1905_v38  ;;  %v4034_v17 = vpop.f32.mrb[29].mxu1 }
 0xab7   :  { %v2537_v21 = vsel %vm1522_vm3, %v2440_v13, -inf }
 0xab9   :  { %v2515_v56 = vpop.f32.mrb[26].mxu0  ;;  %2538 = vmax.xlane.f32.xlu0 %v2537_v21 }
 0xaba   :  { %v2516_v22 = vadd.f32 %v2515_v56, %v1985_v41  ;;  %v4041_v61 = vpop.f32.mrb[27].mxu0 }
 0xabc   :  { %v2540_v23 = vsel %vm1522_vm3, %v2516_v22, -inf }
 0xabd   :  { %2541 = vmax.xlane.f32.xlu1 %v2540_v23 }
 0xabf   :  { %v2521_v24 = vpop.xlane.xlu0 %2520 }
 0xac0   :  { %v2543_v26 = vsub.f32 %v1980_v39, %v2521_v24 }
 0xac2   :  { %v2551_v27 = vmul.f32 1.442695, %v2543_v26 }
 0xac4   :  { %4433 = vpow2.f32 %v2551_v27 }
 0xace   :  { %4329 = vrot.lane.b32.xlu1 %v4893_v6, %s4498_s6  ;;  %v2524_v6 = vpop.xlane.xlu1 %2523 }
 0xacf   :  { %4324 = vrot.lane.b32.xlu0 %v4876_v59, %s4498_s6  ;;  %v2544_v28 = vsub.f32 %v2060_v50, %v2524_v6  ;;  %v5003_v59 = vpop.eup %4433 }
 0xad1   :  { %v2553_v29 = vmul.f32 1.442695, %v2544_v28 }
 0xad2   :  { %4334 = vrot.lane.b32.xlu1 %v4925_v9, %s4498_s6  ;;  %v2567_v9 = vsel %vm1522_vm3, %v5003_v59, 0.0 }
 0xad3   :  { %4344 = vrot.lane.b32.xlu0 %v4923_v8, %s4498_s6  ;;  %4435 = vpow2.f32 %v2553_v29 }
 0xad6   :  { %4339 = vrot.lane.b32.xlu1 %v4931_v12, %s4498_s6 }
 0xada   :  { %4349 = vrot.lane.b32.xlu1 %v4942_v19, %s4498_s6 }
 0xadd   :  { %v5007_v8 = vpop.eup %4435 }
 0xade   :  { %v2570_v12 = vsel %vm1522_vm3, %v5007_v8, 0.0 }
 0xaf2   :  { %2568 = vadd.xlane.f32.xlu0 %v2567_v9 }
 0xafe   :  { %2571 = vadd.xlane.f32.xlu1 %v2570_v12 }
 0xb3a   :  { %v2530_v19 = vpop.xlane.xlu0 %2529 }
 0xb3b   :  { %v2546_v30 = vsub.f32 %v2212_v57, %v2530_v19 }
 0xb3d   :  { %v2557_v20 = vmul.f32 1.442695, %v2546_v30 }
 0xb3e   :  { %v2527_v46 = vpop.xlane.xlu0 %2526 }
 0xb3f   :  { %4437 = vpow2.f32 %v2557_v20  ;;  %v2545_v48 = vsub.f32 %v2136_v60, %v2527_v46 }
 0xb41   :  { %v2555_v44 = vmul.f32 1.442695, %v2545_v48 }
 0xb42   :  { %v2536_v45 = vpop.xlane.xlu1 %2535  ;;  %v2533_v32 = vpop.xlane.xlu0 %2532 }
 0xb43   :  { %4439 = vpow2.f32 %v2555_v44  ;;  %v2548_v33 = vsub.f32 %v2364_v3, %v2536_v45  ;;  %v2547_v34 = vsub.f32 %v2288_v18, %v2533_v32 }
 0xb45   :  { %v2561_v35 = vmul.f32 1.442695, %v2548_v33  ;;  %v2559_v36 = vmul.f32 1.442695, %v2547_v34 }
 0xb46   :  { %v2539_v38 = vpop.xlane.xlu0 %2538 }
 0xb47   :  { %4441 = vpow2.f32 %v2561_v35  ;;  %v2549_v40 = vsub.f32 %v2440_v13, %v2539_v38 }
 0xb48   :  { %4443 = vpow2.f32 %v2559_v36 }
 0xb49   :  { %v5011_v39 = vpop.eup %4437  ;;  %v2563_v43 = vmul.f32 1.442695, %v2549_v40 }
 0xb4a   :  { %v2542_v41 = vpop.xlane.xlu1 %2541  ;;  %v4325_v42 = vpop.permute.xlu0 %4324  ;;  %v2576_v47 = vsel %vm1522_vm3, %v5011_v39, 0.0 }
 0xb4b   :  { %4445 = vpow2.f32 %v2563_v43  ;;  %v2550_v49 = vsub.f32 %v2516_v22, %v2542_v41  ;;  %v4327_v50 = vunpack.i.h.bf16 %v4325_v42  ;;  %v4326_v52 = vunpack.i.l.bf16 %v4325_v42  ;;  %2577 = vadd.xlane.f32.xlu1 %v2576_v47 }
 0xb4d   :  { %v5015_v53 = vpop.eup %4439  ;;  %v2565_v54 = vmul.f32 1.442695, %v2550_v49  ;;  %v4204_v55 = vpack.c.bf16 %v4327_v50, %v4326_v52 }
 0xb4e   :  { %v4330_v57 = vpop.permute.xlu1 %4329  ;;  %v2573_v58 = vsel %vm1522_vm3, %v5015_v53, 0.0  ;;  %v5045_v13 = vpop.permute.xlu0 %4344 }
 0xb4f   :  { %4447 = vpow2.f32 %v2565_v54  ;;  %2574 = vadd.xlane.f32.xlu0 %v2573_v58  ;;  %4205 = vmatpush3.bf16.msra.mxu1 %v4204_v55  ;;  %v4332_v24 = vunpack.i.h.bf16 %v4330_v57  ;;  %v4331_v26 = vunpack.i.l.bf16 %v4330_v57  ;;  %v4347_v47 = vunpack.i.h.bf16 %v5045_v13 }
 0xb50   :  { %4206 = vmatprep.subr.bf16.mxu1 %v4504_v51  ;;  %v4346_v49 = vunpack.i.l.bf16 %v5045_v13 }
 0xb51   :  { %v5020_v60 = vpop.eup %4441 }
 0xb52   :  { %v5022_v62 = vpop.eup %4443  ;;  %v4335_v63 = vpop.permute.xlu1 %4334  ;;  %v2582_v16 = vsel %vm1522_vm3, %v5020_v60, 0.0 }
 0xb53   :  { %v4337_v18 = vunpack.i.h.bf16 %v4335_v63  ;;  %v4336_v2 = vunpack.i.l.bf16 %v4335_v63  ;;  %2583 = vadd.xlane.f32.xlu1 %v2582_v16  ;;  %v2579_v0 = vsel %vm1522_vm3, %v5022_v62, 0.0 }
 0xb54   :  { %2580 = vadd.xlane.f32.xlu0 %v2579_v0 }
 0xb55   :  { %v5028_v3 = vpop.eup %4445  ;;  %v4210_v4 = vpack.c.bf16 %v4337_v18, %v4336_v2  ;;  %v4216_v18 = vpack.c.bf16 %v4347_v47, %v4346_v49 }
 0xb56   :  { %v2585_v5 = vsel %vm1522_vm3, %v5028_v3, 0.0  ;;  %v4340_v21 = vpop.permute.xlu1 %4339 }
 0xb57   :  { %4211 = vmatpush3.bf16.msra.mxu0 %v4210_v4  ;;  %v4342_v29 = vunpack.i.h.bf16 %v4340_v21  ;;  %v4341_v9 = vunpack.i.l.bf16 %v4340_v21 }
 0xb58   :  { %2586 = vadd.xlane.f32.xlu0 %v2585_v5  ;;  %4215 = vmatprep.subr.bf16.mxu0 %v4504_v51 }
 0xb59   :  { %v5033_v7 = vpop.eup %4447  ;;  %v4213_v30 = vpack.c.bf16 %v4342_v29, %v4341_v9 }
 0xb5a   :  { %v2588_v10 = vsel %vm1522_vm3, %v5033_v7, 0.0  ;;  %v4350_v56 = vpop.permute.xlu1 %4349 }
 0xb5b   :  { %2589 = vadd.xlane.f32.xlu1 %v2588_v10  ;;  %v4352_v34 = vunpack.i.h.bf16 %v4350_v56  ;;  %v4351_v35 = vunpack.i.l.bf16 %v4350_v56 }
 0xb5d   :  { %v4219_v50 = vpack.c.bf16 %v4352_v34, %v4351_v35 }
 0xb6c   :  { %4359 = vrot.lane.b32.xlu1 %v4955_v31, %s4498_s6 }
 0xb6e   :  { %4354 = vrot.lane.b32.xlu0 %v4938_v25, %s4498_s6 }
 0xb70   :  { %4369 = vrot.lane.b32.xlu1 %v4825_v1, %s4500_s11  ;;  %v4207_v1 = vpack.c.bf16 %v4332_v24, %v4331_v26 }
 0xb72   :  { %4364 = vrot.lane.b32.xlu0 %v4839_v11, %s4500_s11 }
 0xb7f   :  { %v2569_v17 = vpop.xlane.xlu0 %2568 }
 0xb80   :  { %4449 = vrcp.f32 %v2569_v17 }
 0xb8a   :  { %v4450_v22 = vpop.eup %4449 }
 0xb8b   :  { %v2599_v61 = vmul.f32 %v4450_v22, %v2569_v17  ;;  %v2572_v23 = vpop.xlane.xlu1 %2571 }
 0xb8c   :  { %4451 = vrcp.f32 %v2572_v23 }
 0xb8d   :  { %v2607_v31 = vsub.f32 2.0, %v2599_v61 }
 0xb8f   :  { %v2615_v25 = vmul.f32 %v4450_v22, %v2607_v31 }
 0xb91   :  { %v2623_v27 = vmul.f32 %v5003_v59, %v2615_v25 }
 0xb93   :  { %4047 = vmatmul.mubr.msk.f32.vlgmr.msra.gmra.mrb[30].mxu1 %vm1522_vm3, %v2623_v27 }
 0xb94   :  { %4208 = vmatpush3.bf16.msra.mxu1 %v4207_v1  ;;  %4053 = vmatprep.mubr.msk.f32.mxu1 %vm4494_vm1, %v4493_v37 }
 0xb95   :  { %4212 = vmatprep.subr.bf16.mxu1 %v4504_v51 }
 0xb96   :  { %v4452_v11 = vpop.eup %4451 }
 0xb97   :  { %v2600_v6 = vmul.f32 %v4452_v11, %v2572_v23 }
 0xb99   :  { %v2608_v28 = vsub.f32 2.0, %v2600_v6 }
 0xb9b   :  { %v2616_v12 = vmul.f32 %v4452_v11, %v2608_v28 }
 0xb9d   :  { %v2624_v19 = vmul.f32 %v5007_v8, %v2616_v12 }
 0xb9f   :  { %4054 = vmatmul.mubr.msk.f32.vlgmr.msra.gmra.mrb[32].mxu1 %vm1522_vm3, %v2624_v19 }
 0xba0   :  { %4214 = vmatpush3.bf16.msra.mxu1 %v4213_v30  ;;  %4067 = vmatprep.mubr.msk.f32.mxu1 %vm4494_vm1, %v4493_v37 }
 0xba1   :  { %4218 = vmatprep.subr.bf16.mxu1 %v4504_v51 }
 0xbd8   :  { %v2578_v59 = vpop.xlane.xlu1 %2577 }
 0xbd9   :  { %4453 = vrcp.f32 %v2578_v59 }
 0xbdc   :  { %v2575_v20 = vpop.xlane.xlu0 %2574 }
 0xbdd   :  { %4455 = vrcp.f32 %v2575_v20 }
 0xbe0   :  { %v2584_v46 = vpop.xlane.xlu1 %2583 }
 0xbe1   :  { %4457 = vrcp.f32 %v2584_v46  ;;  %v2581_v48 = vpop.xlane.xlu0 %2580 }
 0xbe2   :  { %4459 = vrcp.f32 %v2581_v48 }
 0xbe3   :  { %v4454_v44 = vpop.eup %4453 }
 0xbe4   :  { %v2602_v45 = vmul.f32 %v4454_v44, %v2578_v59 }
 0xbe5   :  { %v2587_v8 = vpop.xlane.xlu0 %2586 }
 0xbe6   :  { %v2610_v32 = vsub.f32 2.0, %v2602_v45  ;;  %4461 = vrcp.f32 %v2587_v8 }
 0xbe7   :  { %v4456_v33 = vpop.eup %4455 }
 0xbe8   :  { %v2618_v36 = vmul.f32 %v4454_v44, %v2610_v32  ;;  %v2601_v38 = vmul.f32 %v4456_v33, %v2575_v20  ;;  %v2590_v40 = vpop.xlane.xlu1 %2589 }
 0xbe9   :  { %4463 = vrcp.f32 %v2590_v40  ;;  %v4355_v63 = vpop.permute.xlu0 %4354 }
 0xbea   :  { %v2626_v43 = vmul.f32 %v5011_v39, %v2618_v36  ;;  %v2609_v41 = vsub.f32 2.0, %v2601_v38  ;;  %v4357_v13 = vunpack.i.h.bf16 %v4355_v63  ;;  %v4356_v17 = vunpack.i.l.bf16 %v4355_v63 }
 0xbeb   :  { %v4458_v42 = vpop.eup %4457 }
 0xbec   :  { %v4460_v52 = vpop.eup %4459  ;;  %v2617_v54 = vmul.f32 %v4456_v33, %v2609_v41  ;;  %v2604_v55 = vmul.f32 %v4458_v42, %v2584_v46  ;;  %v4360_v57 = vpop.permute.xlu1 %4359  ;;  %4068 = vmatmul.mubr.msk.f32.vlgmr.msra.gmra.mrb[34].mxu1 %vm1522_vm3, %v2626_v43  ;;  %v4222_v26 = vpack.c.bf16 %v4357_v13, %v4356_v17 }
 0xbed   :  { %v2603_v58 = vmul.f32 %v4460_v52, %v2581_v48  ;;  %4220 = vmatpush3.bf16.msra.mxu1 %v4219_v50  ;;  %4081 = vmatprep.mubr.msk.f32.mxu1 %vm4494_vm1, %v4493_v37  ;;  %v4362_v0 = vunpack.i.h.bf16 %v4360_v57  ;;  %v4361_v4 = vunpack.i.l.bf16 %v4360_v57  ;;  %v4365_v11 = vpop.permute.xlu0 %4364 }
 0xbee   :  { %v2625_v39 = vmul.f32 %v5015_v53, %v2617_v54  ;;  %v2612_v16 = vsub.f32 2.0, %v2604_v55  ;;  %4224 = vmatprep.subr.bf16.mxu1 %v4504_v51  ;;  %v4367_v29 = vunpack.i.h.bf16 %v4365_v11  ;;  %v4366_v9 = vunpack.i.l.bf16 %v4365_v11 }
 0xbef   :  { %v2611_v2 = vsub.f32 2.0, %v2603_v58  ;;  %v4225_v31 = vpack.c.bf16 %v4362_v0, %v4361_v4  ;;  %v29_v58 = vld [vmem:[%s5173_s2 + $0x78] ss:$0 sm:$0xff] }
 0xbf0   :  { %v4462_v5 = vpop.eup %4461  ;;  %v2620_v10 = vmul.f32 %v4458_v42, %v2612_v16  ;;  %4061 = vmatmul.mubr.msk.f32.vlgmr.msra.gmra.mrb[28].mxu0 %vm1522_vm3, %v2625_v39  ;;  %v4370_v1 = vpop.permute.xlu1 %4369  ;;  %v4227_v19 = vpack.c.bf16 %v4367_v29, %v4366_v9 }
 0xbf1   :  { %v2619_v21 = vmul.f32 %v4460_v52, %v2611_v2  ;;  %v2605_v56 = vmul.f32 %v4462_v5, %v2587_v8  ;;  %4217 = vmatpush3.bf16.msra.mxu0 %v4216_v18  ;;  %4074 = vmatprep.mubr.msk.f32.mxu0 %vm4494_vm1, %v4493_v37  ;;  %v4372_v6 = vunpack.i.h.bf16 %v4370_v1  ;;  %v4371_v28 = vunpack.i.l.bf16 %v4370_v1  ;;  %v3520_v1 = vld [vmem:[%s5173_s2 + $0x88] sm:$0xff] }
 0xbf2   :  { %v2628_v53 = vmul.f32 %v5020_v60, %v2620_v10  ;;  %4221 = vmatprep.subr.bf16.mxu0 %v4504_v51 }
 0xbf3   :  { %v4464_v22 = vpop.eup %4463  ;;  %v2627_v61 = vmul.f32 %v5022_v62, %v2619_v21  ;;  %v2613_v23 = vsub.f32 2.0, %v2605_v56  ;;  %v4231_v12 = vpack.c.bf16 %v4372_v6, %v4371_v28  ;;  %v3521_v6 = vld [vmem:[%s5173_s2 + $0xa0] sm:$0xff]  ;;  %v3522_v28 = vld [vmem:[%s5173_s2 + $0xb8] sm:$0xff] }
 0xbf4   :  { %v2606_v24 = vmul.f32 %v4464_v22, %v2590_v40  ;;  %4082 = vmatmul.mubr.msk.f32.vlgmr.msra.gmra.mrb[36].mxu1 %vm1522_vm3, %v2628_v53  ;;  %v4388_v29 = vpack.i.bf16 %v3522_v28, %v3521_v6 }
 0xbf5   :  { %v2621_v25 = vmul.f32 %v4462_v5, %v2613_v23  ;;  %4075 = vmatmul.mubr.msk.f32.vlgmr.msra.gmra.mrb[30].mxu0 %vm1522_vm3, %v2627_v61  ;;  %4226 = vmatpush3.bf16.msra.mxu1 %v4225_v31  ;;  %v3428_v23 = vld [vmem:[%s5173_s2 + $0x10] sm:$0xff]  ;;  %v3429_v31 = vld [vmem:[%s5173_s2 + $0x28] sm:$0xff] }
 0xbf6   :  { %v2614_v27 = vsub.f32 2.0, %v2606_v24  ;;  %4223 = vmatpush3.bf16.msra.mxu0 %v4222_v26  ;;  %4088 = vmatprep.mubr.msk.f32.mxu0 %vm4494_vm1, %v4493_v37  ;;  %v4235_v24 = vpack.c.bf16 %v3429_v31, %v3428_v23  ;;  %v3430_v26 = vld [vmem:[%s5173_s2 + $0x40] sm:$0xff] }
 0xbf7   :  { %v2629_v51 = vmul.f32 %v5028_v3, %v2621_v25  ;;  %4095 = vmatprep.mubr.msk.f32.mxu1 %vm4494_vm1, %v4493_v37  ;;  %4228 = vmatprep.subr.bf16.mxu0 %v4227_v19  ;;  %v3431_v25 = vld [vmem:[%s5173_s2 + $0x58] sm:$0xff] }
 0xbf8   :  { %v2622_v60 = vmul.f32 %v4464_v22, %v2614_v27  ;;  %4236 = vmatprep.subr.bf16.mxu1 %v4235_v24  ;;  %v4239_v27 = vpack.c.bf16 %v3431_v25, %v3430_v26 }
 0xbf9   :  { %4089 = vmatmul.mubr.msk.f32.vlgmr.msra.gmra.mrb[32].mxu0 %vm1522_vm3, %v2629_v51  ;;  %v4373_v51 = vpack.i.bf16 %v3429_v31, %v3428_v23 }
 0xbfa   :  { %v2630_v62 = vmul.f32 %v5033_v7, %v2622_v60  ;;  %4230 = vmatpush3.bf16.msra.mxu0 %v4227_v19  ;;  %v4378_v60 = vpack.i.bf16 %v3431_v25, %v3430_v26 }
 0xbfb   :  { %4232 = vmatprep.subr.bf16.mxu0 %v4231_v12 }
 0xbfc   :  { %4096 = vmatmul.mubr.msk.f32.vlgmr.msra.gmra.mrb[38].mxu1 %vm1522_vm3, %v2630_v62  ;;  %v3519_v62 = vld [vmem:[%s5173_s2 + $0x70] sm:$0xff] }
 0xbfd   :  { %4238 = vmatpush3.bf16.msra.mxu1 %v4235_v24  ;;  %v4383_v11 = vpack.i.bf16 %v3520_v1, %v3519_v62 }
 0xbfe   :  { %4234 = vmatpush3.bf16.msra.mxu0 %v4231_v12  ;;  %4240 = vmatprep.subr.bf16.mxu1 %v4239_v27 }
 0xc01   :  { %4242 = vmatpush3.bf16.msra.mxu1 %v4239_v27 }
 0xc66   :  { %v2706_v37 = vpop.f32.mrb[30].mxu1 }
 0xc67   :  { %v4048_v3 = vpop.f32.mrb[31].mxu1 }
 0xc72   :  { %v2785_v30 = vpop.f32.mrb[32].mxu1 }
 0xc73   :  { %v4055_v59 = vpop.f32.mrb[33].mxu1 }
 0xcbf   :  { %v2943_v20 = vpop.f32.mrb[34].mxu1 }
 0xcc0   :  { %3267 = vrot.lane.b32.xlu1 %v2943_v20, %s4501_s12  ;;  %v4069_v7 = vpop.f32.mrb[35].mxu1 }
 0xcc3   :  { %v2864_v46 = vpop.f32.mrb[28].mxu0 }
 0xcc4   :  { %3265 = vrot.lane.b32.xlu0 %v2864_v46, %s4501_s12  ;;  %v4062_v48 = vpop.f32.mrb[29].mxu0  ;;  %v30_v46 = vld [vmem:[%s5173_s2 + $0x79] ss:$0 sm:$0xff] }
 0xcc7   :  { %v3101_v44 = vpop.f32.mrb[36].mxu1 }
 0xcc8   :  { %v3022_v45 = vpop.f32.mrb[30].mxu0  ;;  %3275 = vrot.lane.b32.xlu1 %v3101_v44, %s4502_s13  ;;  %v4083_v8 = vpop.f32.mrb[37].mxu1 }
 0xcc9   :  { %3273 = vrot.lane.b32.xlu0 %v3022_v45, %s4502_s13  ;;  %v4076_v32 = vpop.f32.mrb[31].mxu0 }
 0xccc   :  { %v3180_v33 = vpop.f32.mrb[32].mxu0 }
 0xccd   :  { %3281 = vrot.lane.b32.xlu0 %v3180_v33, %s4503_s14  ;;  %v4090_v34 = vpop.f32.mrb[33].mxu0  ;;  %v31_v33 = vld [vmem:[%s5173_s2 + $0x7a] ss:$0 sm:$0xff] }
 0xccf   :  { %v3259_v35 = vpop.f32.mrb[38].mxu1 }
 0xcd0   :  { %3283 = vrot.lane.b32.xlu1 %v3259_v35, %s4503_s14  ;;  %v4097_v36 = vpop.f32.mrb[39].mxu1 }
 0xd32   :  { %v3268_v40 = vpop.permute.xlu1 %3267 }
 0xd33   :  { %v3288_v52 = vsel %vm169_vm2, %v2785_v30, %v3268_v40 }
 0xd36   :  { %v3266_v38 = vpop.permute.xlu0 %3265 }
 0xd37   :  { %v3287_v41 = vsel %vm169_vm2, %v2706_v37, %v3266_v38 }
 0xd3a   :  { %v3276_v42 = vpop.permute.xlu1 %3275 }
 0xd3b   :  { %v3274_v43 = vpop.permute.xlu0 %3273  ;;  %v3290_v54 = vsel %vm1522_vm3, %v3288_v52, %v3276_v42 }
 0xd3c   :  { %v3289_v47 = vsel %vm1522_vm3, %v3287_v41, %v3274_v43 }
 0xd3f   :  { %v3282_v49 = vpop.permute.xlu0 %3281 }
 0xd40   :  { %v3291_v50 = vsel %vm1525_vm4, %v3289_v47, %v3282_v49 }
 0xd41   :  { %4106 = vmatprep.mubr.msk.f32.mxu0 %vm36_vm0, %v3291_v50 }
 0xd42   :  { %v3284_v55 = vpop.permute.xlu1 %3283 }
 0xd43   :  { %v3292_v57 = vsel %vm1525_vm4, %v3290_v54, %v3284_v55 }
 0xd44   :  { %4107 = vmatmul.mubr.msk.f32.vlgmr.msra.gmra.mrb[34].mxu0 %vm36_vm0, %v3292_v57 }
 0xe17   :  { %v4108_v63 = vpop.f32.mrb[34].mxu0 }
 0xe18   :  { %v3395_v39 = vadd.f32 %v4108_v63, %v4811_v14  ;;  %v3385_v16 = vpop.f32.mrb[35].mxu0  ;;  %v32_v63 = vld [vmem:[%s5173_s2 + $0x7b] ss:$0 sm:$0xff] }
 0xe19   :  { %v3394_v18 = vadd.f32 %v3385_v16, %v4813_v15 }
 0xe1a   :  { %v5100_v2 = vadd.f32 %v3395_v39, %v29_v58 }
 0xe1b   :  { %v5102_v0 = vadd.f32 %v3394_v18, %v29_v58 }
 0xe1c   :  { %v3401_v4 = vsel %vm36_vm0, %v5100_v2, 0.0 }
 0xe1d   :  { %3402 = vadd.xlane.f32.xlu1 %v3401_v4  ;;  %v3398_v5 = vsel %vm36_vm0, %v5102_v0, 0.0 }
 0xe1e   :  { %3399 = vadd.xlane.f32.xlu0 %v3398_v5 }
 0xe2e   :  { %4379 = vrot.lane.b32.xlu1 %v4378_v60, %s4499_s1 }
 0xe32   :  { %4384 = vrot.lane.b32.xlu1 %v4383_v11, %s4499_s1 }
 0xe36   :  { %4389 = vrot.lane.b32.xlu1 %v4388_v29, %s4499_s1 }
 0xeaa   :  { %v3403_v10 = vpop.xlane.xlu1 %3402 }
 0xeab   :  { %v3405_v13 = vmul.f32 0.03125, %v3403_v10  ;;  %v3400_v17 = vpop.xlane.xlu0 %3399 }
 0xeac   :  { %v3404_v21 = vmul.f32 0.03125, %v3400_v17 }
 0xead   :  { %v3407_v14 = vsub.f32 %v5100_v2, %v3405_v13  ;;  %v33_v13 = vld [vmem:[%s5173_s2 + $0x7c] ss:$0 sm:$0xff] }
 0xeae   :  { %v3406_v15 = vsub.f32 %v5102_v0, %v3404_v21  ;;  %v4380_v20 = vpop.permute.xlu1 %4379 }
 0xeaf   :  { %v3409_v22 = vmul.f32 %v3407_v14, %v3407_v14  ;;  %v4382_v45 = vunpack.i.h.bf16 %v4380_v20  ;;  %v4381_v8 = vunpack.i.l.bf16 %v4380_v20 }
 0xeb0   :  { %v3408_v56 = vmul.f32 %v3406_v15, %v3406_v15 }
 0xeb1   :  { %v3413_v61 = vsel %vm36_vm0, %v3409_v22, 0.0  ;;  %v4247_v35 = vpack.c.bf16 %v4382_v45, %v4381_v8 }
 0xeb2   :  { %v3410_v53 = vsel %vm36_vm0, %v3408_v56, 0.0  ;;  %v4385_v38 = vpop.permute.xlu1 %4384 }
 0xeb3   :  { %3411 = vadd.xlane.f32.xlu0 %v3410_v53  ;;  %v4387_v43 = vunpack.i.h.bf16 %v4385_v38  ;;  %v4386_v41 = vunpack.i.l.bf16 %v4385_v38 }
 0xeb5   :  { %v4251_v49 = vpack.c.bf16 %v4387_v43, %v4386_v41 }
 0xeb6   :  { %v4390_v52 = vpop.permute.xlu1 %4389 }
 0xeb7   :  { %3414 = vadd.xlane.f32.xlu0 %v3413_v61  ;;  %v4392_v54 = vunpack.i.h.bf16 %v4390_v52  ;;  %v4391_v55 = vunpack.i.l.bf16 %v4390_v52 }
 0xeb9   :  { %v4255_v58 = vpack.c.bf16 %v4392_v54, %v4391_v55 }
 0xecd   :  { %4374 = vrot.lane.b32.xlu0 %v4373_v51, %s4499_s1 }
 0xf40   :  { %v3412_v9 = vpop.xlane.xlu0 %3411 }
 0xf41   :  { %v3416_v12 = vmul.f32 0.03125, %v3412_v9 }
 0xf43   :  { %v3418_v19 = vadd.f32 1e-05, %v3416_v12 }
 0xf44   :  { %v3415_v37 = vpop.xlane.xlu0 %3414 }
 0xf45   :  { %4465 = vrsqrt.f32 %v3418_v19  ;;  %v3417_v3 = vmul.f32 0.03125, %v3415_v37 }
 0xf47   :  { %v3419_v30 = vadd.f32 1e-05, %v3417_v3 }
 0xf48   :  { %v4375_v59 = vpop.permute.xlu0 %4374 }
 0xf49   :  { %4467 = vrsqrt.f32 %v3419_v30  ;;  %v4377_v48 = vunpack.i.h.bf16 %v4375_v59  ;;  %v4376_v44 = vunpack.i.l.bf16 %v4375_v59 }
 0xf4b   :  { %v4243_v34 = vpack.c.bf16 %v4377_v48, %v4376_v44 }
 0xf4d   :  { %4244 = vmatprep.subr.bf16.mxu0 %v4243_v34 }
 0xf4e   :  { %4246 = vmatpush3.bf16.msra.mxu0 %v4243_v34 }
 0xf4f   :  { %v4466_v7 = vpop.eup %4465  ;;  %4248 = vmatprep.subr.bf16.mxu0 %v4247_v35 }
 0xf50   :  { %v3422_v32 = vmul.f32 %v4466_v7, %v3406_v15 }
 0xf52   :  { %v3424_v36 = vmul.f32 %v3422_v32, %v30_v46  ;;  %4250 = vmatpush3.bf16.msra.mxu0 %v4247_v35 }
 0xf53   :  { %v4468_v40 = vpop.eup %4467  ;;  %4252 = vmatprep.subr.bf16.mxu0 %v4251_v49 }
 0xf54   :  { %v3423_v42 = vmul.f32 %v4468_v40, %v3407_v14  ;;  %v3426_v47 = vadd.f32 %v3424_v36, %v31_v33 }
 0xf56   :  { %v3425_v50 = vmul.f32 %v3423_v42, %v30_v46  ;;  %4117 = vmatprep.mubr.msk.f32.mxu1 %vm36_vm0, %v3426_v47  ;;  %4254 = vmatpush3.bf16.msra.mxu0 %v4251_v49 }
 0xf57   :  { %4256 = vmatprep.subr.bf16.mxu0 %v4255_v58 }
 0xf58   :  { %v3427_v57 = vadd.f32 %v3425_v50, %v31_v33 }
 0xf5a   :  { %4118 = vmatmul.mubr.msk.f32.vlgmr.msra.gmra.mrb[40].mxu1 %vm36_vm0, %v3427_v57  ;;  %4258 = vmatpush3.bf16.msra.mxu0 %v4255_v58 }
0x102d   :  { %v4119_v39 = vpop.f32.mrb[40].mxu1 }
0x102e   :  { %v3510_v16 = vadd.f32 %v4119_v39, %v32_v63  ;;  %v3504_v18 = vpop.f32.mrb[41].mxu1 }
0x102f   :  { %v3505_v4 = vadd.f32 %v3504_v18, %v32_v63 }
0x1030   :  { %v3514_v10 = vmax.f32 %v3510_v16, 0.0 }
0x1031   :  { %v3513_v5 = vmax.f32 %v3505_v4, 0.0 }
0x1033   :  { %4136 = vmatprep.mubr.msk.f32.mxu0 %vm3555_vm6, %v3513_v5 }
0x1034   :  { %4137 = vmatmul.mubr.msk.f32.vlgmr.msra.gmra.mrb[36].mxu0 %vm3555_vm6, %v3514_v10 }
0x1107   :  { %v4138_v17 = vpop.f32.mrb[36].mxu0 }
0x1108   :  { %v3638_v21 = vadd.f32 %v4138_v17, %v5100_v2  ;;  %v3628_v14 = vpop.f32.mrb[37].mxu0 }
0x1109   :  { %v3637_v15 = vadd.f32 %v3628_v14, %v5102_v0 }
0x110a   :  { %v3640_v56 = vadd.f32 %v3638_v21, %v33_v13 }
0x110b   :  { %v3639_v53 = vadd.f32 %v3637_v15, %v33_v13 }
0x110c   :  { %3642 = vst.msk [vmem:[#allocation2 + $0x8] sm:$0xff] %vm36_vm0, %v3640_v56 }
0x110d   :  { %3641 = vst.msk [vmem:[#allocation2] sm:$0xff] %vm36_vm0, %v3639_v53 }
0x110e   :  { %4480 = shalt.err (!%p4477_p4)
}
0x110f   :  { %s4481_s5 = scalar_lea.hbm %s5174_s3, 256 }
0x1110   :  { %p4482_p5 = scmp.ne.s32.totalorder %s5174_s3, %s4481_s5  ;;  %p4485_p6 = scmp.lt.u32.totalorder %s4481_s5, %s5174_s3 }
0x1112   :  { %p4487_p7 = pnand %p4485_p6, %p4482_p5 }
0x1114   :  { %4490 = shalt.err (!%p4487_p7)
}
0x1115   :  { %s4506_s21 = smov 128  }
0x1116   :  { %3654 = dma.vmem_to_hbm [thread:$0]  %s3649_s20, 256, %s5174_s3, [#allocation3], %s4506_s21, %s4506_s21, %s4501_s12  }
0x1117   :  { %4491 = dma.done.wait [#allocation3], 256  }
0x1118   :  { %4492 = vsyncadd [#allocation3], 4294967040 }
0x1119   :  { %3658 = vsyncpa [#allocation3], 1 }

</bundles_post_ra>
